<compile_context>
chip_gen: v7x
topology: tpu7x:2x2x1
jax: 0.10.0
libtpu: 0.0.40
codegen_flags: <defaults>
</compile_context>

<pallas_src>
import math

import jax
import jax.numpy as jnp
from jax.experimental import pallas as pl
from jax.experimental.pallas import tpu as pltpu


# ---------------------------------------------------------------------------
# Kernel 1: both CNN branches fused into one MXU dot.
#   p_ref    : (B_blk, 4*NP_pad, Kpad) bf16, rows ordered offset*NP_pad + pixel,
#              lanes [s-branch patch | l-branch patch | zero pad].
#   w_ref    : (Kpad, 128) bf16 block-diagonal [w_s 0; 0 w_l].
#   b_ref    : (1, 128) f32  [bias_s | bias_l].
#   wavg_ref : (NP_pad, 128) f32 masked avg-pool weights (per-branch 1/n_valid).
#   o_ref    : (B_blk, 128) f32  [feat_s | feat_l].
# ---------------------------------------------------------------------------
def _cnn_kernel(p_ref, w_ref, b_ref, wavg_ref, o_ref):
    bblk = p_ref.shape[0]
    kpad = p_ref.shape[2]
    np_pad = wavg_ref.shape[0]

    # one merged MXU dot for both branches, all 4 offsets, all rows in the block
    p = p_ref[...].reshape(bblk * 4 * np_pad, kpad)
    z = jnp.dot(p, w_ref[...], preferred_element_type=jnp.float32)   # (M, 128)
    z = z.reshape(bblk, 4 * np_pad, 128)

    # 2x2 max-pool: max over the 4 offset groups (sublane-aligned static slices)
    m = jnp.maximum(
        jnp.maximum(z[:, 0 * np_pad:1 * np_pad], z[:, 1 * np_pad:2 * np_pad]),
        jnp.maximum(z[:, 2 * np_pad:3 * np_pad], z[:, 3 * np_pad:4 * np_pad]))

    # bias + ReLU after the max (max_i relu(z_i + b) == relu(max_i z_i + b))
    m = jnp.maximum(m + b_ref[...], 0.0)                              # (B_blk, NP_pad, 128)

    # adaptive_avg_pool2d((1,1)): masked mean over valid pooled pixels per branch
    o_ref[...] = jnp.sum(m * wavg_ref[...], axis=1)                   # (B_blk, 128)


# ---------------------------------------------------------------------------
# Kernel 2: fused post-CNN head (lane-packed 2-token layout: [tok1 | tok2]).
#   f_ref    : (B, 128) bf16  [feat_s | feat_l]
#   aqkv_ref : (128, 6E) bf16  folded (proj + ca.fc) o in_proj
#   cqkv_ref : (1, 6E) f32     folded bias
#   wof_ref  : (2E, 2E) bf16   folded out_proj o fc ; bof_ref (1, 2E) f32 bias
#   g/be     : LN affine ; wf/bf : final Linear(2E -> 1) as a lane reduce
# ---------------------------------------------------------------------------
def _head_kernel(f_ref, aqkv_ref, cqkv_ref, wof_ref, bof_ref,
                 g_ref, be_ref, wf_ref, bf_ref, o_ref):
    E = wof_ref.shape[0] // 2
    scale = 1.0 / math.sqrt(E)

    # fused (proj_s|proj_l) + ca.fc + in_proj : (B, 6E) = [q1|k1|v1|q2|k2|v2]
    qkv = jnp.dot(f_ref[...], aqkv_ref[...],
                  preferred_element_type=jnp.float32) + cqkv_ref[...]
    q1 = qkv[:, 0 * E:1 * E]; k1 = qkv[:, 1 * E:2 * E]; v1 = qkv[:, 2 * E:3 * E]
    q2 = qkv[:, 3 * E:4 * E]; k2 = qkv[:, 4 * E:5 * E]; v2 = qkv[:, 5 * E:6 * E]

    # single-head attention over the 2-token sequence (per batch row)
    s11 = jnp.sum(q1 * k1, axis=1, keepdims=True) * scale
    s12 = jnp.sum(q1 * k2, axis=1, keepdims=True) * scale
    s21 = jnp.sum(q2 * k1, axis=1, keepdims=True) * scale
    s22 = jnp.sum(q2 * k2, axis=1, keepdims=True) * scale

    def attend(sa, sb):
        mx = jnp.maximum(sa, sb)
        ea = jnp.exp(sa - mx)
        eb = jnp.exp(sb - mx)
        inv = 1.0 / (ea + eb)
        return (ea * inv) * v1 + (eb * inv) * v2

    c12 = jnp.concatenate([attend(s11, s12), attend(s21, s22)], axis=1)   # (B, 2E)

    # folded out_proj o fc, then ReLU (single MXU dot)
    h12 = jnp.maximum(
        jnp.dot(c12.astype(wof_ref.dtype), wof_ref[...],
                preferred_element_type=jnp.float32) + bof_ref[...], 0.0)

    # per-token LayerNorm  ->  x_combined = [LN(y1) | LN(y2)]  (B, 2E)
    def ln(h):
        mu = jnp.mean(h, axis=1, keepdims=True)
        var = jnp.mean((h - mu) * (h - mu), axis=1, keepdims=True)
        return (h - mu) * jax.lax.rsqrt(var + 1e-5)

    y = jnp.concatenate([ln(h12[:, :E]), ln(h12[:, E:])], axis=1)
    y = y * g_ref[...] + be_ref[...]

    # final sigmoid(Linear(2E -> 1)) as a lane reduce (avoids a 1-lane matmul)
    logit = jnp.sum(y * wf_ref[...], axis=1, keepdims=True) + bf_ref[...]
    o_ref[...] = 1.0 / (1.0 + jnp.exp(-logit))


# ---------------------------------------------------------------------------
# Plain-JAX glue (all fused under jit): im2col grouped by pool-window offset.
# Feature order is (kh, kw, c), matching conv_w.transpose(2,3,1,0).reshape(K, CO).
# TODO(synk): at non-toy H,W the im2col below has ~Kx HBM read amplification and
# the per-step block exceeds v7x's 64 MiB VMEM; build taps in-kernel from raw
# NHWC blocks and add a chunked pooled-pixel reduction grid axis instead.
# ---------------------------------------------------------------------------
def _pool_grouped_patches(x_nchw, patch_size):
    B, C, H, W = x_nchw.shape
    ho, wo = H - patch_size + 1, W - patch_size + 1
    hp, wp = ho // 2, wo // 2                      # MaxPool2d(2,2) truncates odd edges
    k = patch_size * patch_size * C
    np_valid = hp * wp

    x = jnp.transpose(x_nchw, (0, 2, 3, 1))        # NHWC
    taps = [x[:, kh:kh + 2 * hp, kw:kw + 2 * wp, :]
            for kh in range(patch_size) for kw in range(patch_size)]
    pat = jnp.stack(taps, axis=3)                  # (B, 2hp, 2wp, ps*ps, C)
    pat = pat.reshape(B, hp, 2, wp, 2, k)
    pat = jnp.transpose(pat, (0, 2, 4, 1, 3, 5))   # (B, dh, dw, hp, wp, K)
    return pat.reshape(B, 4, np_valid, k), np_valid, k


def _blk_diag(w):
    z = jnp.zeros_like(w)
    return jnp.concatenate([jnp.concatenate([w, z], axis=1),
                            jnp.concatenate([z, w], axis=1)], axis=0)


def _round_up(n, m):
    return -(-n // m) * m


# ---------------------------------------------------------------------------
# Parameters (deterministic synthetic init) and full forward pass
# ---------------------------------------------------------------------------
def init_params(key, input_channels, patch_size_s, patch_size_l,
                linear_projection_size, transformer_input_size):
    E = transformer_input_size
    P = linear_projection_size
    keys = iter(jax.random.split(key, 32))

    def w(shape, scale=0.05):
        return scale * jax.random.normal(next(keys), shape, jnp.float32)

    def attn_block():
        return {
            "in_proj_w": w((3 * E, E)), "in_proj_b": w((3 * E,)),
            "out_w": w((E, E)), "out_b": w((E,)),
            "fc_w": w((E, E)), "fc_b": w((E,)),
            "ln_g": jnp.ones((E,), jnp.float32),
            "ln_b": jnp.zeros((E,), jnp.float32),
        }

    return {
        "conv_s_w": w((64, input_channels, patch_size_s, patch_size_s)),
        "conv_s_b": w((64,)),
        "conv_l_w": w((64, input_channels, patch_size_l, patch_size_l)),
        "conv_l_b": w((64,)),
        "proj_s_w": w((P, 64)), "proj_s_b": w((P,)),
        "proj_l_w": w((P, 64)), "proj_l_b": w((P,)),
        "ca": attn_block(),      # CrossAttention(transformer_input_size), num_heads=1
        # --- parameters below exist in the module but feed only dead branches ---
        "mst": attn_block(),
        "freq_w": w((1, E)), "freq_b": w((1,)),
        "fusion_w": w((1, 2 * E)), "fusion_b": w((1,)),
        "final_w": w((1, 2 * E)), "final_b": w((1,)),
    }


def m2tr_forward(x, params, *, patch_size_s, patch_size_l, num_heads):
    del num_heads  # only used by the dead MultiScaleTransformer branch
    E = params["ca"]["fc_w"].shape[0]
    B = x.shape[0]

    # ---- im2col (plain-JAX glue, fused under jit), merged across branches ----
    pat_s, nps, ks = _pool_grouped_patches(x, patch_size_s)
    pat_l, npl, kl = _pool_grouped_patches(x, patch_size_l)
    np_pad = max(_round_up(nps, 8), _round_up(npl, 8))   # common pooled-pixel pad
    kpad = _round_up(ks + kl, 128)                       # lane-dense K for the MXU

    pat_s = jnp.pad(pat_s, ((0, 0), (0, 0), (0, np_pad - nps), (0, 0)))
    pat_l = jnp.pad(pat_l, ((0, 0), (0, 0), (0, np_pad - npl), (0, 0)))
    pat = jnp.concatenate([pat_s, pat_l], axis=-1)                   # (B,4,NP,ks+kl)
    pat = jnp.pad(pat, ((0, 0), (0, 0), (0, 0), (0, kpad - ks - kl)))
    pat = pat.reshape(B, 4 * np_pad, kpad).astype(jnp.bfloat16)

    # batch blocking: several rows per grid step (all of B at toy sizes)
    b_blk = B if B <= 8 else 8
    b_pad = _round_up(B, b_blk)
    if b_pad != B:
        pat = jnp.pad(pat, ((0, b_pad - B), (0, 0), (0, 0)))

    # merged block-diagonal conv weight (Kpad, 128) = [w_s 0; 0 w_l], bf16
    w_s = jnp.transpose(params["conv_s_w"], (2, 3, 1, 0)).reshape(ks, 64)
    w_l = jnp.transpose(params["conv_l_w"], (2, 3, 1, 0)).reshape(kl, 64)
    w_blk = jnp.zeros((kpad, 128), jnp.float32)
    w_blk = w_blk.at[:ks, :64].set(w_s).at[ks:ks + kl, 64:].set(w_l)
    w_blk = w_blk.astype(jnp.bfloat16)
    bias = jnp.concatenate([params["conv_s_b"], params["conv_l_b"]]).reshape(1, 128)

    # masked avg-pool weights, per branch (hoisted out of the kernel)
    row = jnp.arange(np_pad, dtype=jnp.int32)[:, None]
    wavg = jnp.concatenate(
        [jnp.where(row < nps, 1.0 / nps, 0.0) * jnp.ones((1, 64), jnp.float32),
         jnp.where(row < npl, 1.0 / npl, 0.0) * jnp.ones((1, 64), jnp.float32)],
        axis=1)                                                      # (NP_pad, 128)

    feats = pl.pallas_call(
        _cnn_kernel,
        out_shape=jax.ShapeDtypeStruct((b_pad, 128), jnp.float32),
        grid=(b_pad // b_blk,),
        in_specs=[
            pl.BlockSpec((b_blk, 4 * np_pad, kpad), lambda b: (b, 0, 0)),
            pl.BlockSpec((kpad, 128), lambda b: (0, 0)),
            pl.BlockSpec((1, 128), lambda b: (0, 0)),
            pl.BlockSpec((np_pad, 128), lambda b: (0, 0)),
        ],
        out_specs=pl.BlockSpec((b_blk, 128), lambda b: (b, 0)),
        compiler_params=pltpu.CompilerParams(dimension_semantics=("parallel",)),
    )(pat, w_blk, bias, wavg)
    feats = feats[:B].astype(jnp.bfloat16)      # lane-dense [feat_s | feat_l]

    # ---- fold the head's linear chains offline (kernel 2: only 2 MXU dots) ----
    ca = params["ca"]
    a_s = (ca["fc_w"] @ params["proj_s_w"]).T                       # proj_s o ca.fc
    a_l = (ca["fc_w"] @ params["proj_l_w"]).T                       # proj_l o ca.fc
    c_s = ca["fc_w"] @ params["proj_s_b"] + ca["fc_b"]
    c_l = ca["fc_w"] @ params["proj_l_b"] + ca["fc_b"]
    zero = jnp.zeros_like(a_s)
    a_blk = jnp.concatenate([jnp.concatenate([a_s, zero], axis=1),
                             jnp.concatenate([zero, a_l], axis=1)], axis=0)  # (128, 2E)
    c_blk = jnp.concatenate([c_s, c_l]).reshape(1, 2 * E)

    win_blk = _blk_diag(ca["in_proj_w"].T)                          # (2E, 6E)
    bin_blk = jnp.tile(ca["in_proj_b"], 2).reshape(1, 6 * E)
    aqkv = (a_blk @ win_blk).astype(jnp.bfloat16)                   # (128, 6E)
    cqkv = c_blk @ win_blk + bin_blk                                # (1, 6E) f32

    wo_blk = _blk_diag(ca["out_w"].T)                               # (2E, 2E)
    bo_blk = jnp.tile(ca["out_b"], 2).reshape(1, 2 * E)
    wfc_blk = _blk_diag(ca["fc_w"].T)
    bfc_blk = jnp.tile(ca["fc_b"], 2).reshape(1, 2 * E)
    wof = (wo_blk @ wfc_blk).astype(jnp.bfloat16)                   # out_proj o fc
    bof = bo_blk @ wfc_blk + bfc_blk                                # (1, 2E) f32

    g_blk = jnp.tile(ca["ln_g"], 2).reshape(1, 2 * E)
    be_blk = jnp.tile(ca["ln_b"], 2).reshape(1, 2 * E)
    wfin = params["final_w"].reshape(1, 2 * E)
    bfin = params["final_b"].reshape(1, 1)

    args = (feats, aqkv, cqkv, wof, bof, g_blk, be_blk, wfin, bfin)

    x_final = pl.pallas_call(
        _head_kernel,
        out_shape=jax.ShapeDtypeStruct((B, 1), jnp.float32),
        grid=(1,),
        in_specs=[pl.BlockSpec(a.shape, lambda i, n=a.ndim: (0,) * n) for a in args],
        out_specs=pl.BlockSpec((B, 1), lambda i: (0, 0)),
    )(*args)

    # TODO(synk): MultiScaleTransformer / FrequencyFilter / CrossModalityFusion branches are
    # dead code w.r.t. the returned value (and shape-inconsistent in the reference); dropped.
    return x_final


if __name__ == "__main__":
    B, C, H, W = 2, 4, 16, 16
    patch_size_s, patch_size_l = 3, 5
    linear_projection_size = transformer_input_size = 64
    num_heads = 1

    key = jax.random.PRNGKey(0)
    kx, kp = jax.random.split(key)
    x = jax.random.normal(kx, (B, C, H, W), jnp.float32)
    params = init_params(kp, C, patch_size_s, patch_size_l,
                         linear_projection_size, transformer_input_size)

    fwd = jax.jit(m2tr_forward,
                  static_argnames=("patch_size_s", "patch_size_l", "num_heads"))
    out = fwd(x, params, patch_size_s=patch_size_s,
              patch_size_l=patch_size_l, num_heads=num_heads)
    out = jax.block_until_ready(out)
    assert out.shape == (B, 1) and bool(jnp.all(jnp.isfinite(out)))
    print("KERNEL_OK")
</pallas_src>

<mosaic_0001>
module attributes {stable_mosaic.version = 11 : i64} {
  func.func @_cnn_kernel(%arg0: i32, %arg1: memref<2x224x256xbf16, #tpu.memory_space<vmem>>, %arg2: memref<256x128xbf16, #tpu.memory_space<vmem>>, %arg3: memref<1x128xf32, #tpu.memory_space<vmem>>, %arg4: memref<56x128xf32, #tpu.memory_space<vmem>>, %arg5: memref<2x128xf32, #tpu.memory_space<vmem>>) attributes {dimension_semantics = [#tpu.dimension_semantics<parallel>], iteration_bounds = array<i64: 1>, scalar_prefetch = 0 : i64, scratch_operands = 0 : i64, tpu.core_type = #tpu.core_type<tc>, window_params = [{transform_indices = @transform_0, window_bounds = array<i64: 2, 224, 256>}, {pipeline_mode = #tpu.pipeline_mode<synchronous>, transform_indices = @transform_1, window_bounds = array<i64: 256, 128>}, {pipeline_mode = #tpu.pipeline_mode<synchronous>, transform_indices = @transform_2, window_bounds = array<i64: 1, 128>}, {pipeline_mode = #tpu.pipeline_mode<synchronous>, transform_indices = @transform_3, window_bounds = array<i64: 56, 128>}, {transform_indices = @transform_4, window_bounds = array<i64: 2, 128>}]} {
    %c0 = arith.constant 0 : index
    %c0_0 = arith.constant 0 : index
    %c0_1 = arith.constant 0 : index
    %0 = vector.load %arg1[%c0, %c0_0, %c0_1] : memref<2x224x256xbf16, #tpu.memory_space<vmem>>, vector<2x224x256xbf16>
    %1 = vector.shape_cast %0 : vector<2x224x256xbf16> to vector<448x256xbf16>
    %c0_2 = arith.constant 0 : index
    %c0_3 = arith.constant 0 : index
    %2 = vector.load %arg2[%c0_2, %c0_3] : memref<256x128xbf16, #tpu.memory_space<vmem>>, vector<256x128xbf16>
    %cst = arith.constant dense<0.000000e+00> : vector<448x128xf32>
    %3 = tpu.matmul %1, %2, %cst {dimension_numbers = #tpu.dot_dimension_numbers<[1], [0], [0], [1], [0, 0, 1, 1], [], []>} : vector<448x256xbf16>, vector<256x128xbf16>, vector<448x128xf32> -> vector<448x128xf32>
    %4 = vector.shape_cast %3 : vector<448x128xf32> to vector<2x224x128xf32>
    %5 = vector.extract_strided_slice %4 {offsets = [0, 0, 0], sizes = [2, 56, 128], strides = [1, 1, 1]} : vector<2x224x128xf32> to vector<2x56x128xf32>
    %6 = vector.extract_strided_slice %4 {offsets = [0, 56, 0], sizes = [2, 56, 128], strides = [1, 1, 1]} : vector<2x224x128xf32> to vector<2x56x128xf32>
    %7 = arith.maximumf %5, %6 : vector<2x56x128xf32>
    %8 = vector.extract_strided_slice %4 {offsets = [0, 112, 0], sizes = [2, 56, 128], strides = [1, 1, 1]} : vector<2x224x128xf32> to vector<2x56x128xf32>
    %9 = vector.extract_strided_slice %4 {offsets = [0, 168, 0], sizes = [2, 56, 128], strides = [1, 1, 1]} : vector<2x224x128xf32> to vector<2x56x128xf32>
    %10 = arith.maximumf %8, %9 : vector<2x56x128xf32>
    %11 = arith.maximumf %7, %10 : vector<2x56x128xf32>
    %c0_4 = arith.constant 0 : index
    %c0_5 = arith.constant 0 : index
    %12 = vector.load %arg3[%c0_4, %c0_5] : memref<1x128xf32, #tpu.memory_space<vmem>>, vector<1x128xf32>
    %13 = vector.shape_cast %12 : vector<1x128xf32> to vector<1x1x128xf32>
    %14 = vector.broadcast %13 : vector<1x1x128xf32> to vector<2x56x128xf32>
    %15 = arith.addf %11, %14 : vector<2x56x128xf32>
    %cst_6 = arith.constant 0.000000e+00 : f32
    %16 = vector.broadcast %cst_6 : f32 to vector<2x56x128xf32>
    %17 = arith.maximumf %15, %16 : vector<2x56x128xf32>
    %c0_7 = arith.constant 0 : index
    %c0_8 = arith.constant 0 : index
    %18 = vector.load %arg4[%c0_7, %c0_8] : memref<56x128xf32, #tpu.memory_space<vmem>>, vector<56x128xf32>
    %19 = vector.shape_cast %18 : vector<56x128xf32> to vector<1x56x128xf32>
    %20 = vector.broadcast %19 : vector<1x56x128xf32> to vector<2x56x128xf32>
    %21 = arith.mulf %17, %20 : vector<2x56x128xf32>
    %cst_9 = arith.constant dense<0.000000e+00> : vector<2x128xf32>
    %22 = vector.multi_reduction <add>, %21, %cst_9 [1] : vector<2x56x128xf32> to vector<2x128xf32>
    %c0_10 = arith.constant 0 : index
    %c0_11 = arith.constant 0 : index
    %23 = vector.load %arg5[%c0_10, %c0_11] : memref<2x128xf32, #tpu.memory_space<vmem>>, vector<2x128xf32>
    tpu.vector_store %arg5[%c0_10, %c0_11], %22 {strides = array<i32>} : memref<2x128xf32, #tpu.memory_space<vmem>>, vector<2x128xf32>,
    return
  }
  func.func @transform_0(%arg0: i32) -> (i32, i32, i32) {
    %c0_i32 = arith.constant 0 : i32
    %c0_i32_0 = arith.constant 0 : i32
    %c0_i32_1 = arith.constant 0 : i32
    return %arg0, %c0_i32, %c0_i32_0 : i32, i32, i32
  }
  func.func @transform_1(%arg0: i32) -> (i32, i32) {
    %c0_i32 = arith.constant 0 : i32
    %c0_i32_0 = arith.constant 0 : i32
    %c0_i32_1 = arith.constant 0 : i32
    return %c0_i32, %c0_i32_0 : i32, i32
  }
  func.func @transform_2(%arg0: i32) -> (i32, i32) {
    %c0_i32 = arith.constant 0 : i32
    %c0_i32_0 = arith.constant 0 : i32
    %c0_i32_1 = arith.constant 0 : i32
    return %c0_i32, %c0_i32_0 : i32, i32
  }
  func.func @transform_3(%arg0: i32) -> (i32, i32) {
    %c0_i32 = arith.constant 0 : i32
    %c0_i32_0 = arith.constant 0 : i32
    %c0_i32_1 = arith.constant 0 : i32
    return %c0_i32, %c0_i32_0 : i32, i32
  }
  func.func @transform_4(%arg0: i32) -> (i32, i32) {
    %c0_i32 = arith.constant 0 : i32
    %c0_i32_0 = arith.constant 0 : i32
    return %arg0, %c0_i32 : i32, i32
  }
}

module attributes {stable_mosaic.version = 11 : i64} {
  func.func @_head_kernel(%arg0: i32, %arg1: memref<2x128xbf16, #tpu.memory_space<vmem>>, %arg2: memref<128x384xbf16, #tpu.memory_space<vmem>>, %arg3: memref<1x384xf32, #tpu.memory_space<vmem>>, %arg4: memref<128x128xbf16, #tpu.memory_space<vmem>>, %arg5: memref<1x128xf32, #tpu.memory_space<vmem>>, %arg6: memref<1x128xf32, #tpu.memory_space<vmem>>, %arg7: memref<1x128xf32, #tpu.memory_space<vmem>>, %arg8: memref<1x128xf32, #tpu.memory_space<vmem>>, %arg9: memref<1x1xf32, #tpu.memory_space<vmem>>, %arg10: memref<2x1xf32, #tpu.memory_space<vmem>>) attributes {dimension_semantics = [#tpu.dimension_semantics<arbitrary>], iteration_bounds = array<i64: 1>, scalar_prefetch = 0 : i64, scratch_operands = 0 : i64, tpu.core_type = #tpu.core_type<tc>, window_params = [{pipeline_mode = #tpu.pipeline_mode<synchronous>, transform_indices = @transform_0, window_bounds = array<i64: 2, 128>}, {pipeline_mode = #tpu.pipeline_mode<synchronous>, transform_indices = @transform_1, window_bounds = array<i64: 128, 384>}, {pipeline_mode = #tpu.pipeline_mode<synchronous>, transform_indices = @transform_2, window_bounds = array<i64: 1, 384>}, {pipeline_mode = #tpu.pipeline_mode<synchronous>, transform_indices = @transform_3, window_bounds = array<i64: 128, 128>}, {pipeline_mode = #tpu.pipeline_mode<synchronous>, transform_indices = @transform_4, window_bounds = array<i64: 1, 128>}, {pipeline_mode = #tpu.pipeline_mode<synchronous>, transform_indices = @transform_5, window_bounds = array<i64: 1, 128>}, {pipeline_mode = #tpu.pipeline_mode<synchronous>, transform_indices = @transform_6, window_bounds = array<i64: 1, 128>}, {pipeline_mode = #tpu.pipeline_mode<synchronous>, transform_indices = @transform_7, window_bounds = array<i64: 1, 128>}, {pipeline_mode = #tpu.pipeline_mode<synchronous>, transform_indices = @transform_8, window_bounds = array<i64: 1, 1>}, {pipeline_mode = #tpu.pipeline_mode<synchronous>, transform_indices = @transform_9, window_bounds = array<i64: 2, 1>}]} {
    %c0 = arith.constant 0 : index
    %c0_0 = arith.constant 0 : index
    %0 = vector.load %arg1[%c0, %c0_0] : memref<2x128xbf16, #tpu.memory_space<vmem>>, vector<2x128xbf16>
    %c0_1 = arith.constant 0 : index
    %c0_2 = arith.constant 0 : index
    %1 = vector.load %arg2[%c0_1, %c0_2] : memref<128x384xbf16, #tpu.memory_space<vmem>>, vector<128x384xbf16>
    %cst = arith.constant dense<0.000000e+00> : vector<2x384xf32>
    %2 = tpu.matmul %0, %1, %cst {dimension_numbers = #tpu.dot_dimension_numbers<[1], [0], [0], [1], [0, 0, 1, 1], [], []>} : vector<2x128xbf16>, vector<128x384xbf16>, vector<2x384xf32> -> vector<2x384xf32>
    %c0_3 = arith.constant 0 : index
    %c0_4 = arith.constant 0 : index
    %3 = vector.load %arg3[%c0_3, %c0_4] : memref<1x384xf32, #tpu.memory_space<vmem>>, vector<1x384xf32>
    %4 = vector.broadcast %3 : vector<1x384xf32> to vector<2x384xf32>
    %5 = arith.addf %2, %4 : vector<2x384xf32>
    %6 = vector.extract_strided_slice %5 {offsets = [0, 0], sizes = [2, 64], strides = [1, 1]} : vector<2x384xf32> to vector<2x64xf32>
    %7 = vector.extract_strided_slice %5 {offsets = [0, 64], sizes = [2, 64], strides = [1, 1]} : vector<2x384xf32> to vector<2x64xf32>
    %8 = vector.extract_strided_slice %5 {offsets = [0, 128], sizes = [2, 64], strides = [1, 1]} : vector<2x384xf32> to vector<2x64xf32>
    %9 = vector.extract_strided_slice %5 {offsets = [0, 192], sizes = [2, 64], strides = [1, 1]} : vector<2x384xf32> to vector<2x64xf32>
    %10 = vector.extract_strided_slice %5 {offsets = [0, 256], sizes = [2, 64], strides = [1, 1]} : vector<2x384xf32> to vector<2x64xf32>
    %11 = vector.extract_strided_slice %5 {offsets = [0, 320], sizes = [2, 64], strides = [1, 1]} : vector<2x384xf32> to vector<2x64xf32>
    %12 = arith.mulf %6, %7 : vector<2x64xf32>
    %cst_5 = arith.constant dense<0.000000e+00> : vector<2xf32>
    %13 = vector.multi_reduction <add>, %12, %cst_5 [1] : vector<2x64xf32> to vector<2xf32>
    %14 = vector.shape_cast %13 : vector<2xf32> to vector<2x1xf32>
    %cst_6 = arith.constant 1.250000e-01 : f32
    %15 = vector.broadcast %cst_6 : f32 to vector<2x1xf32>
    %16 = arith.mulf %14, %15 : vector<2x1xf32>
    %17 = arith.mulf %6, %10 : vector<2x64xf32>
    %cst_7 = arith.constant dense<0.000000e+00> : vector<2xf32>
    %18 = vector.multi_reduction <add>, %17, %cst_7 [1] : vector<2x64xf32> to vector<2xf32>
    %19 = vector.shape_cast %18 : vector<2xf32> to vector<2x1xf32>
    %cst_8 = arith.constant 1.250000e-01 : f32
    %20 = vector.broadcast %cst_8 : f32 to vector<2x1xf32>
    %21 = arith.mulf %19, %20 : vector<2x1xf32>
    %22 = arith.mulf %9, %7 : vector<2x64xf32>
    %cst_9 = arith.constant dense<0.000000e+00> : vector<2xf32>
    %23 = vector.multi_reduction <add>, %22, %cst_9 [1] : vector<2x64xf32> to vector<2xf32>
    %24 = vector.shape_cast %23 : vector<2xf32> to vector<2x1xf32>
    %cst_10 = arith.constant 1.250000e-01 : f32
    %25 = vector.broadcast %cst_10 : f32 to vector<2x1xf32>
    %26 = arith.mulf %24, %25 : vector<2x1xf32>
    %27 = arith.mulf %9, %10 : vector<2x64xf32>
    %cst_11 = arith.constant dense<0.000000e+00> : vector<2xf32>
    %28 = vector.multi_reduction <add>, %27, %cst_11 [1] : vector<2x64xf32> to vector<2xf32>
    %29 = vector.shape_cast %28 : vector<2xf32> to vector<2x1xf32>
    %cst_12 = arith.constant 1.250000e-01 : f32
    %30 = vector.broadcast %cst_12 : f32 to vector<2x1xf32>
    %31 = arith.mulf %29, %30 : vector<2x1xf32>
    %32 = arith.maximumf %16, %21 : vector<2x1xf32>
    %33 = arith.subf %16, %32 : vector<2x1xf32>
    %34 = math.exp %33 : vector<2x1xf32>
    %35 = arith.subf %21, %32 : vector<2x1xf32>
    %36 = math.exp %35 : vector<2x1xf32>
    %37 = arith.addf %34, %36 : vector<2x1xf32>
    %cst_13 = arith.constant 1.000000e+00 : f32
    %38 = vector.broadcast %cst_13 : f32 to vector<2x1xf32>
    %39 = arith.divf %38, %37 : vector<2x1xf32>
    %40 = arith.mulf %34, %39 : vector<2x1xf32>
    %41 = vector.broadcast %40 : vector<2x1xf32> to vector<2x64xf32>
    %42 = arith.mulf %41, %8 : vector<2x64xf32>
    %43 = arith.mulf %36, %39 : vector<2x1xf32>
    %44 = vector.broadcast %43 : vector<2x1xf32> to vector<2x64xf32>
    %45 = arith.mulf %44, %11 : vector<2x64xf32>
    %46 = arith.addf %42, %45 : vector<2x64xf32>
    %47 = arith.maximumf %26, %31 : vector<2x1xf32>
    %48 = arith.subf %26, %47 : vector<2x1xf32>
    %49 = math.exp %48 : vector<2x1xf32>
    %50 = arith.subf %31, %47 : vector<2x1xf32>
    %51 = math.exp %50 : vector<2x1xf32>
    %52 = arith.addf %49, %51 : vector<2x1xf32>
    %cst_14 = arith.constant 1.000000e+00 : f32
    %53 = vector.broadcast %cst_14 : f32 to vector<2x1xf32>
    %54 = arith.divf %53, %52 : vector<2x1xf32>
    %55 = arith.mulf %49, %54 : vector<2x1xf32>
    %56 = vector.broadcast %55 : vector<2x1xf32> to vector<2x64xf32>
    %57 = arith.mulf %56, %8 : vector<2x64xf32>
    %58 = arith.mulf %51, %54 : vector<2x1xf32>
    %59 = vector.broadcast %58 : vector<2x1xf32> to vector<2x64xf32>
    %60 = arith.mulf %59, %11 : vector<2x64xf32>
    %61 = arith.addf %57, %60 : vector<2x64xf32>
    %62 = tpu.concatenate %46, %61 in 1 : vector<2x64xf32>, vector<2x64xf32> -> vector<2x128xf32>
    %63 = arith.truncf %62 : vector<2x128xf32> to vector<2x128xbf16>
    %c0_15 = arith.constant 0 : index
    %c0_16 = arith.constant 0 : index
    %64 = vector.load %arg4[%c0_15, %c0_16] : memref<128x128xbf16, #tpu.memory_space<vmem>>, vector<128x128xbf16>
    %cst_17 = arith.constant dense<0.000000e+00> : vector<2x128xf32>
    %65 = tpu.matmul %63, %64, %cst_17 {dimension_numbers = #tpu.dot_dimension_numbers<[1], [0], [0], [1], [0, 0, 1, 1], [], []>} : vector<2x128xbf16>, vector<128x128xbf16>, vector<2x128xf32> -> vector<2x128xf32>
    %c0_18 = arith.constant 0 : index
    %c0_19 = arith.constant 0 : index
    %66 = vector.load %arg5[%c0_18, %c0_19] : memref<1x128xf32, #tpu.memory_space<vmem>>, vector<1x128xf32>
    %67 = vector.broadcast %66 : vector<1x128xf32> to vector<2x128xf32>
    %68 = arith.addf %65, %67 : vector<2x128xf32>
    %cst_20 = arith.constant 0.000000e+00 : f32
    %69 = vector.broadcast %cst_20 : f32 to vector<2x128xf32>
    %70 = arith.maximumf %68, %69 : vector<2x128xf32>
    %71 = vector.extract_strided_slice %70 {offsets = [0, 0], sizes = [2, 64], strides = [1, 1]} : vector<2x128xf32> to vector<2x64xf32>
    %cst_21 = arith.constant dense<0.000000e+00> : vector<2xf32>
    %72 = vector.multi_reduction <add>, %71, %cst_21 [1] : vector<2x64xf32> to vector<2xf32>
    %73 = vector.shape_cast %72 : vector<2xf32> to vector<2x1xf32>
    %cst_22 = arith.constant 6.400000e+01 : f32
    %74 = vector.broadcast %cst_22 : f32 to vector<2x1xf32>
    %75 = arith.divf %73, %74 : vector<2x1xf32>
    %76 = vector.broadcast %75 : vector<2x1xf32> to vector<2x64xf32>
    %77 = arith.subf %71, %76 : vector<2x64xf32>
    %78 = vector.broadcast %75 : vector<2x1xf32> to vector<2x64xf32>
    %79 = arith.subf %71, %78 : vector<2x64xf32>
    %80 = arith.mulf %77, %79 : vector<2x64xf32>
    %cst_23 = arith.constant dense<0.000000e+00> : vector<2xf32>
    %81 = vector.multi_reduction <add>, %80, %cst_23 [1] : vector<2x64xf32> to vector<2xf32>
    %82 = vector.shape_cast %81 : vector<2xf32> to vector<2x1xf32>
    %cst_24 = arith.constant 6.400000e+01 : f32
    %83 = vector.broadcast %cst_24 : f32 to vector<2x1xf32>
    %84 = arith.divf %82, %83 : vector<2x1xf32>
    %85 = vector.broadcast %75 : vector<2x1xf32> to vector<2x64xf32>
    %86 = arith.subf %71, %85 : vector<2x64xf32>
    %cst_25 = arith.constant 9.99999974E-6 : f32
    %87 = vector.broadcast %cst_25 : f32 to vector<2x1xf32>
    %88 = arith.addf %84, %87 : vector<2x1xf32>
    %89 = math.rsqrt %88 : vector<2x1xf32>
    %90 = vector.broadcast %89 : vector<2x1xf32> to vector<2x64xf32>
    %91 = arith.mulf %86, %90 : vector<2x64xf32>
    %92 = vector.extract_strided_slice %70 {offsets = [0, 64], sizes = [2, 64], strides = [1, 1]} : vector<2x128xf32> to vector<2x64xf32>
    %cst_26 = arith.constant dense<0.000000e+00> : vector<2xf32>
    %93 = vector.multi_reduction <add>, %92, %cst_26 [1] : vector<2x64xf32> to vector<2xf32>
    %94 = vector.shape_cast %93 : vector<2xf32> to vector<2x1xf32>
    %cst_27 = arith.constant 6.400000e+01 : f32
    %95 = vector.broadcast %cst_27 : f32 to vector<2x1xf32>
    %96 = arith.divf %94, %95 : vector<2x1xf32>
    %97 = vector.broadcast %96 : vector<2x1xf32> to vector<2x64xf32>
    %98 = arith.subf %92, %97 : vector<2x64xf32>
    %99 = vector.broadcast %96 : vector<2x1xf32> to vector<2x64xf32>
    %100 = arith.subf %92, %99 : vector<2x64xf32>
    %101 = arith.mulf %98, %100 : vector<2x64xf32>
    %cst_28 = arith.constant dense<0.000000e+00> : vector<2xf32>
    %102 = vector.multi_reduction <add>, %101, %cst_28 [1] : vector<2x64xf32> to vector<2xf32>
    %103 = vector.shape_cast %102 : vector<2xf32> to vector<2x1xf32>
    %cst_29 = arith.constant 6.400000e+01 : f32
    %104 = vector.broadcast %cst_29 : f32 to vector<2x1xf32>
    %105 = arith.divf %103, %104 : vector<2x1xf32>
    %106 = vector.broadcast %96 : vector<2x1xf32> to vector<2x64xf32>
    %107 = arith.subf %92, %106 : vector<2x64xf32>
    %cst_30 = arith.constant 9.99999974E-6 : f32
    %108 = vector.broadcast %cst_30 : f32 to vector<2x1xf32>
    %109 = arith.addf %105, %108 : vector<2x1xf32>
    %110 = math.rsqrt %109 : vector<2x1xf32>
    %111 = vector.broadcast %110 : vector<2x1xf32> to vector<2x64xf32>
    %112 = arith.mulf %107, %111 : vector<2x64xf32>
    %113 = tpu.concatenate %91, %112 in 1 : vector<2x64xf32>, vector<2x64xf32> -> vector<2x128xf32>
    %c0_31 = arith.constant 0 : index
    %c0_32 = arith.constant 0 : index
    %114 = vector.load %arg6[%c0_31, %c0_32] : memref<1x128xf32, #tpu.memory_space<vmem>>, vector<1x128xf32>
    %115 = vector.broadcast %114 : vector<1x128xf32> to vector<2x128xf32>
    %116 = arith.mulf %113, %115 : vector<2x128xf32>
    %c0_33 = arith.constant 0 : index
    %c0_34 = arith.constant 0 : index
    %117 = vector.load %arg7[%c0_33, %c0_34] : memref<1x128xf32, #tpu.memory_space<vmem>>, vector<1x128xf32>
    %118 = vector.broadcast %117 : vector<1x128xf32> to vector<2x128xf32>
    %119 = arith.addf %116, %118 : vector<2x128xf32>
    %c0_35 = arith.constant 0 : index
    %c0_36 = arith.constant 0 : index
    %120 = vector.load %arg8[%c0_35, %c0_36] : memref<1x128xf32, #tpu.memory_space<vmem>>, vector<1x128xf32>
    %121 = vector.broadcast %120 : vector<1x128xf32> to vector<2x128xf32>
    %122 = arith.mulf %119, %121 : vector<2x128xf32>
    %cst_37 = arith.constant dense<0.000000e+00> : vector<2xf32>
    %123 = vector.multi_reduction <add>, %122, %cst_37 [1] : vector<2x128xf32> to vector<2xf32>
    %124 = vector.shape_cast %123 : vector<2xf32> to vector<2x1xf32>
    %c0_38 = arith.constant 0 : index
    %c0_39 = arith.constant 0 : index
    %125 = vector.load %arg9[%c0_38, %c0_39] : memref<1x1xf32, #tpu.memory_space<vmem>>, vector<1x1xf32>
    %126 = vector.broadcast %125 : vector<1x1xf32> to vector<2x1xf32>
    %127 = arith.addf %124, %126 : vector<2x1xf32>
    %cst_40 = arith.constant 0.000000e+00 : f32
    %128 = vector.broadcast %cst_40 : f32 to vector<2x1xf32>
    %129 = arith.subf %128, %127 : vector<2x1xf32>
    %130 = math.exp %129 : vector<2x1xf32>
    %cst_41 = arith.constant 1.000000e+00 : f32
    %131 = vector.broadcast %cst_41 : f32 to vector<2x1xf32>
    %132 = arith.addf %131, %130 : vector<2x1xf32>
    %cst_42 = arith.constant 1.000000e+00 : f32
    %133 = vector.broadcast %cst_42 : f32 to vector<2x1xf32>
    %134 = arith.divf %133, %132 : vector<2x1xf32>
    %c0_43 = arith.constant 0 : index
    %c0_44 = arith.constant 0 : index
    %135 = vector.load %arg10[%c0_43, %c0_44] : memref<2x1xf32, #tpu.memory_space<vmem>>, vector<2x1xf32>
    tpu.vector_store %arg10[%c0_43, %c0_44], %134 {strides = array<i32>} : memref<2x1xf32, #tpu.memory_space<vmem>>, vector<2x1xf32>,
    return
  }
  func.func @transform_0(%arg0: i32) -> (i32, i32) {
    %c0_i32 = arith.constant 0 : i32
    %c0_i32_0 = arith.constant 0 : i32
    %c0_i32_1 = arith.constant 0 : i32
    return %c0_i32, %c0_i32_0 : i32, i32
  }
  func.func @transform_1(%arg0: i32) -> (i32, i32) {
    %c0_i32 = arith.constant 0 : i32
    %c0_i32_0 = arith.constant 0 : i32
    %c0_i32_1 = arith.constant 0 : i32
    return %c0_i32, %c0_i32_0 : i32, i32
  }
  func.func @transform_2(%arg0: i32) -> (i32, i32) {
    %c0_i32 = arith.constant 0 : i32
    %c0_i32_0 = arith.constant 0 : i32
    %c0_i32_1 = arith.constant 0 : i32
    return %c0_i32, %c0_i32_0 : i32, i32
  }
  func.func @transform_3(%arg0: i32) -> (i32, i32) {
    %c0_i32 = arith.constant 0 : i32
    %c0_i32_0 = arith.constant 0 : i32
    %c0_i32_1 = arith.constant 0 : i32
    return %c0_i32, %c0_i32_0 : i32, i32
  }
  func.func @transform_4(%arg0: i32) -> (i32, i32) {
    %c0_i32 = arith.constant 0 : i32
    %c0_i32_0 = arith.constant 0 : i32
    %c0_i32_1 = arith.constant 0 : i32
    return %c0_i32, %c0_i32_0 : i32, i32
  }
  func.func @transform_5(%arg0: i32) -> (i32, i32) {
    %c0_i32 = arith.constant 0 : i32
    %c0_i32_0 = arith.constant 0 : i32
    %c0_i32_1 = arith.constant 0 : i32
    return %c0_i32, %c0_i32_0 : i32, i32
  }
  func.func @transform_6(%arg0: i32) -> (i32, i32) {
    %c0_i32 = arith.constant 0 : i32
    %c0_i32_0 = arith.constant 0 : i32
    %c0_i32_1 = arith.constant 0 : i32
    return %c0_i32, %c0_i32_0 : i32, i32
  }
  func.func @transform_7(%arg0: i32) -> (i32, i32) {
    %c0_i32 = arith.constant 0 : i32
    %c0_i32_0 = arith.constant 0 : i32
    %c0_i32_1 = arith.constant 0 : i32
    return %c0_i32, %c0_i32_0 : i32, i32
  }
  func.func @transform_8(%arg0: i32) -> (i32, i32) {
    %c0_i32 = arith.constant 0 : i32
    %c0_i32_0 = arith.constant 0 : i32
    %c0_i32_1 = arith.constant 0 : i32
    return %c0_i32, %c0_i32_0 : i32, i32
  }
  func.func @transform_9(%arg0: i32) -> (i32, i32) {
    %c0_i32 = arith.constant 0 : i32
    %c0_i32_0 = arith.constant 0 : i32
    %c0_i32_1 = arith.constant 0 : i32
    return %c0_i32, %c0_i32_0 : i32, i32
  }
}

</mosaic_0001>

<bundles_post_ra>
// kernel: mul.11
= control target key start
LH: loop header
LB: loop body
LE: loop exit
PB: predicated region body
PF: predicated region fallthrough
CT: control target
= control target key end

     0   :  { %s91_s0 = inlined_call_operand.vmem [shape: f32[56], index: 0, kind: input, shape index: {}]   ;;  %s92_s1 = inlined_call_operand.vmem [shape: f32[56,64], index: 1, kind: output, shape index: {}]  }
   0x1   :  { %v4_v0 = vld [vmem:[%s91_s0] ss:$0 sm:$0xff] }
   0x2   :  { %6 = vbcast.lane.b32.xlu0 %v4_v0, 256  ;;  %19 = vbcast.lane.b32.xlu1 %v4_v0, 272 }
   0x6   :  { %12 = vbcast.lane.b32.xlu0 %v4_v0, 264  ;;  %26 = vbcast.lane.b32.xlu1 %v4_v0, 280 }
   0xa   :  { %33 = vbcast.lane.b32.xlu0 %v4_v0, 288  ;;  %40 = vbcast.lane.b32.xlu1 %v4_v0, 296 }
   0xe   :  { %47 = vbcast.lane.b32.xlu0 %v4_v0, 304 }
  0x74   :  { %v7_v1 = vpop.permute.xlu0 %6  ;;  %v20_v2 = vpop.permute.xlu1 %19 }
  0x75   :  { %8 = vst [vmem:[%s92_s1] sm:$0xff] %v7_v1  ;;  %52 = vst [vmem:[%s92_s1 + $0x10] sm:$0xff] %v20_v2 }
  0x78   :  { %v13_v3 = vpop.permute.xlu0 %12  ;;  %v27_v4 = vpop.permute.xlu1 %26 }
  0x79   :  { %51 = vst [vmem:[%s92_s1 + $0x8] sm:$0xff] %v13_v3  ;;  %53 = vst [vmem:[%s92_s1 + $0x18] sm:$0xff] %v27_v4 }
  0x7c   :  { %v34_v5 = vpop.permute.xlu0 %33  ;;  %v41_v6 = vpop.permute.xlu1 %40 }
  0x7d   :  { %54 = vst [vmem:[%s92_s1 + $0x20] sm:$0xff] %v34_v5  ;;  %55 = vst [vmem:[%s92_s1 + $0x28] sm:$0xff] %v41_v6 }
  0x80   :  { %v48_v7 = vpop.permute.xlu0 %47 }
  0x81   :  { %56 = vst [vmem:[%s92_s1 + $0x30] sm:$0xff] %v48_v7 }

// kernel: tile.28
= control target key start
LH: loop header
LB: loop body
LE: loop exit
PB: predicated region body
PF: predicated region fallthrough
CT: control target
= control target key end

     0   :  { %s34_s0 = inlined_call_operand.vmem [shape: f32[192], index: 0, kind: input, shape index: {}]   ;;  %s35_s1 = inlined_call_operand.vmem [shape: f32[2,192], index: 1, kind: output, shape index: {}]  }
   0x1   :  { %v4_v0 = vld [vmem:[%s34_s0] ss:$0 sm:$0xff]  ;;  %v10_v1 = vld [vmem:[%s34_s0 + $0x1] ss:$0 sm:$0xff] }
   0x2   :  { %5 = vst [vmem:[%s35_s1] sm:$0x3] %v4_v0  ;;  %11 = vst [vmem:[%s35_s1 + $0x2] sm:$0x3] %v10_v1 }

// kernel: m2tr_forward.2
= control target key start
LH: loop header
LB: loop body
LE: loop exit
PB: predicated region body
PF: predicated region fallthrough
CT: control target
= control target key end

     0   :  { %v1077_v0 = vmov 0   ;;  %vm863_vm0 = vcmask 1041409   ;;  %s1544_s1 = inlined_call_operand.vmem [shape: bf16[256,128], index: 1, kind: input, shape index: {}]   ;;  %s1545_s0 = inlined_call_operand.vmem [shape: bf16[2,224,256], index: 0, kind: input, shape index: {}]   ;;  %s1546_s2 = inlined_call_operand.vmem [shape: f32[1,128], index: 2, kind: input, shape index: {}]   ;;  %s1547_s3 = inlined_call_operand.vmem [shape: f32[56,128], index: 3, kind: input, shape index: {}]   ;;  %s1548_s4 = inlined_call_operand.vmem [shape: f32[2,128], index: 4, kind: output, shape index: {}]  }
   0x1   :  { %482 = vmatprep.subr.bf16.mxu0 %v1077_v0  ;;  %944 = vmatprep.subr.bf16.mxu1 %v1077_v0  ;;  %v977_v1 = vld [vmem:[%s1544_s1] sm:$0xff]   ;;  %v978_v2 = vld [vmem:[%s1544_s1 + $0x8] sm:$0xff]   ;;  %v979_v3 = vld [vmem:[%s1544_s1 + $0x10] sm:$0xff]  }
   0x2   :  { %483 = vmatpush1.bf16.msra.mxu0 %v977_v1  ;;  %960 = vmatpush1.bf16.msra.mxu1 %v977_v1  ;;  %v980_v4 = vld [vmem:[%s1544_s1 + $0x18] sm:$0xff]   ;;  %v981_v5 = vld [vmem:[%s1544_s1 + $0x20] sm:$0xff]   ;;  %v982_v7 = vld [vmem:[%s1544_s1 + $0x28] sm:$0xff]  }
   0x3   :  { %484 = vmatprep.subr.bf16.mxu0 %v1077_v0  ;;  %945 = vmatprep.subr.bf16.mxu1 %v1077_v0  ;;  %v995_v6 = vld [vmem:[%s1545_s0 + $0x4] ss:$8 sps:$4 sm:$0xff]   ;;  %v983_v9 = vld [vmem:[%s1544_s1 + $0x30] sm:$0xff]   ;;  %v984_v10 = vld [vmem:[%s1544_s1 + $0x38] sm:$0xff]  }
   0x4   :  { %v998_v8 = vld [vmem:[%s1545_s0 + $0xe4] ss:$8 sps:$4 sm:$0xff]   ;;  %514 = vmatprep.mubr.bf16.mxu0 %v995_v6  ;;  %v987_v13 = vld [vmem:[%s1544_s1 + $0x50] sm:$0xff]   ;;  %v988_v14 = vld [vmem:[%s1544_s1 + $0x58] sm:$0xff]  }
   0x5   :  { %626 = vmatprep.mubr.bf16.mxu1 %v998_v8  ;;  %v985_v11 = vld [vmem:[%s1544_s1 + $0x40] sm:$0xff]   ;;  %v986_v12 = vld [vmem:[%s1544_s1 + $0x48] sm:$0xff]   ;;  %v991_v17 = vld [vmem:[%s1544_s1 + $0x70] sm:$0xff]  }
   0x6   :  { %485 = vmatpush1.bf16.msra.mxu0 %v978_v2  ;;  %961 = vmatpush1.bf16.msra.mxu1 %v978_v2  ;;  %v989_v15 = vld [vmem:[%s1544_s1 + $0x60] sm:$0xff]   ;;  %v990_v16 = vld [vmem:[%s1544_s1 + $0x68] sm:$0xff]   ;;  %v992_v18 = vld [vmem:[%s1544_s1 + $0x78] sm:$0xff]  }
   0x7   :  { %486 = vmatprep.subr.bf16.mxu0 %v1077_v0  ;;  %946 = vmatprep.subr.bf16.mxu1 %v1077_v0  ;;  %v993_v19 = vld [vmem:[%s1545_s0] ss:$8 sps:$4 sm:$0xff]   ;;  %v999_v21 = vld [vmem:[%s1545_s0 + $0x14] ss:$8 sps:$4 sm:$0xff]   ;;  %v1003_v23 = vld [vmem:[%s1545_s0 + $0x10] ss:$8 sps:$4 sm:$0xff]  }
   0x8   :  { %v996_v20 = vld [vmem:[%s1545_s0 + $0xe0] ss:$8 sps:$4 sm:$0xff]   ;;  %v1001_v22 = vld [vmem:[%s1545_s0 + $0xf4] ss:$8 sps:$4 sm:$0xff]   ;;  %v1004_v24 = vld [vmem:[%s1545_s0 + $0xf0] ss:$8 sps:$4 sm:$0xff]  }
   0x9   :  { %v1005_v25 = vld [vmem:[%s1545_s0 + $0x24] ss:$8 sps:$4 sm:$0xff]   ;;  %v1009_v27 = vld [vmem:[%s1545_s0 + $0x20] ss:$8 sps:$4 sm:$0xff]   ;;  %v1011_v29 = vld [vmem:[%s1545_s0 + $0x34] ss:$8 sps:$4 sm:$0xff]  }
   0xa   :  { %487 = vmatpush1.bf16.msra.mxu0 %v979_v3  ;;  %962 = vmatpush1.bf16.msra.mxu1 %v979_v3  ;;  %v1007_v26 = vld [vmem:[%s1545_s0 + $0x104] ss:$8 sps:$4 sm:$0xff]   ;;  %v1010_v28 = vld [vmem:[%s1545_s0 + $0x100] ss:$8 sps:$4 sm:$0xff]   ;;  %v1013_v30 = vld [vmem:[%s1545_s0 + $0x114] ss:$8 sps:$4 sm:$0xff]  }
   0xb   :  { %488 = vmatprep.subr.bf16.mxu0 %v1077_v0  ;;  %947 = vmatprep.subr.bf16.mxu1 %v1077_v0  ;;  %v1015_v31 = vld [vmem:[%s1545_s0 + $0x30] ss:$8 sps:$4 sm:$0xff]   ;;  %v1017_v33 = vld [vmem:[%s1545_s0 + $0x44] ss:$8 sps:$4 sm:$0xff]   ;;  %v1021_v35 = vld [vmem:[%s1545_s0 + $0x40] ss:$8 sps:$4 sm:$0xff]  }
   0xc   :  { %v1016_v32 = vld [vmem:[%s1545_s0 + $0x110] ss:$8 sps:$4 sm:$0xff]   ;;  %v1019_v34 = vld [vmem:[%s1545_s0 + $0x124] ss:$8 sps:$4 sm:$0xff]   ;;  %v1022_v36 = vld [vmem:[%s1545_s0 + $0x120] ss:$8 sps:$4 sm:$0xff]  }
   0xd   :  { %v1023_v37 = vld [vmem:[%s1545_s0 + $0x54] ss:$8 sps:$4 sm:$0xff]   ;;  %v1027_v39 = vld [vmem:[%s1545_s0 + $0x50] ss:$8 sps:$4 sm:$0xff]   ;;  %v1029_v41 = vld [vmem:[%s1545_s0 + $0x64] ss:$8 sps:$4 sm:$0xff]  }
   0xe   :  { %489 = vmatpush1.bf16.msra.mxu0 %v980_v4  ;;  %963 = vmatpush1.bf16.msra.mxu1 %v980_v4  ;;  %v1025_v38 = vld [vmem:[%s1545_s0 + $0x134] ss:$8 sps:$4 sm:$0xff]   ;;  %v1028_v40 = vld [vmem:[%s1545_s0 + $0x130] ss:$8 sps:$4 sm:$0xff]   ;;  %v1031_v42 = vld [vmem:[%s1545_s0 + $0x144] ss:$8 sps:$4 sm:$0xff]  }
   0xf   :  { %490 = vmatprep.subr.bf16.mxu0 %v1077_v0  ;;  %948 = vmatprep.subr.bf16.mxu1 %v1077_v0  ;;  %v1033_v43 = vld [vmem:[%s1545_s0 + $0x60] ss:$8 sps:$4 sm:$0xff]   ;;  %v1035_v45 = vld [vmem:[%s1545_s0 + $0x74] ss:$8 sps:$4 sm:$0xff]   ;;  %v1039_v47 = vld [vmem:[%s1545_s0 + $0x70] ss:$8 sps:$4 sm:$0xff]  }
  0x10   :  { %v1034_v44 = vld [vmem:[%s1545_s0 + $0x140] ss:$8 sps:$4 sm:$0xff]   ;;  %v1037_v46 = vld [vmem:[%s1545_s0 + $0x154] ss:$8 sps:$4 sm:$0xff]   ;;  %v1040_v48 = vld [vmem:[%s1545_s0 + $0x150] ss:$8 sps:$4 sm:$0xff]  }
  0x11   :  { %v1041_v49 = vld [vmem:[%s1545_s0 + $0x84] ss:$8 sps:$4 sm:$0xff]   ;;  %v1045_v51 = vld [vmem:[%s1545_s0 + $0x80] ss:$8 sps:$4 sm:$0xff]   ;;  %v1047_v53 = vld [vmem:[%s1545_s0 + $0x94] ss:$8 sps:$4 sm:$0xff]  }
  0x12   :  { %491 = vmatpush1.bf16.msra.mxu0 %v981_v5  ;;  %964 = vmatpush1.bf16.msra.mxu1 %v981_v5  ;;  %v1043_v50 = vld [vmem:[%s1545_s0 + $0x164] ss:$8 sps:$4 sm:$0xff]   ;;  %v1046_v52 = vld [vmem:[%s1545_s0 + $0x160] ss:$8 sps:$4 sm:$0xff]   ;;  %v1049_v54 = vld [vmem:[%s1545_s0 + $0x174] ss:$8 sps:$4 sm:$0xff]  }
  0x13   :  { %492 = vmatprep.subr.bf16.mxu0 %v1077_v0  ;;  %949 = vmatprep.subr.bf16.mxu1 %v1077_v0  ;;  %v1051_v55 = vld [vmem:[%s1545_s0 + $0x90] ss:$8 sps:$4 sm:$0xff]   ;;  %v1053_v57 = vld [vmem:[%s1545_s0 + $0xa4] ss:$8 sps:$4 sm:$0xff]   ;;  %v1057_v59 = vld [vmem:[%s1545_s0 + $0xa0] ss:$8 sps:$4 sm:$0xff]  }
  0x14   :  { %v1052_v56 = vld [vmem:[%s1545_s0 + $0x170] ss:$8 sps:$4 sm:$0xff]   ;;  %v1055_v58 = vld [vmem:[%s1545_s0 + $0x184] ss:$8 sps:$4 sm:$0xff]   ;;  %v1058_v60 = vld [vmem:[%s1545_s0 + $0x180] ss:$8 sps:$4 sm:$0xff]  }
  0x15   :  { %v1059_v61 = vld [vmem:[%s1545_s0 + $0xb4] ss:$8 sps:$4 sm:$0xff]   ;;  %v1063_v63 = vld [vmem:[%s1545_s0 + $0xb0] ss:$8 sps:$4 sm:$0xff]   ;;  %v1065_v1 = vld [vmem:[%s1545_s0 + $0xc4] ss:$8 sps:$4 sm:$0xff]  }
  0x16   :  { %493 = vmatpush1.bf16.msra.mxu0 %v982_v7  ;;  %965 = vmatpush1.bf16.msra.mxu1 %v982_v7  ;;  %v1061_v62 = vld [vmem:[%s1545_s0 + $0x194] ss:$8 sps:$4 sm:$0xff]   ;;  %v1067_v2 = vld [vmem:[%s1545_s0 + $0x1a4] ss:$8 sps:$4 sm:$0xff]   ;;  %v1069_v3 = vld [vmem:[%s1545_s0 + $0xc0] ss:$8 sps:$4 sm:$0xff]  }
  0x17   :  { %494 = vmatprep.subr.bf16.mxu0 %v1077_v0  ;;  %950 = vmatprep.subr.bf16.mxu1 %v1077_v0  ;;  %v1070_v4 = vld [vmem:[%s1545_s0 + $0x1a0] ss:$8 sps:$4 sm:$0xff]   ;;  %v1071_v5 = vld [vmem:[%s1545_s0 + $0xd4] ss:$8 sps:$4 sm:$0xff]   ;;  %v1075_v7 = vld [vmem:[%s1545_s0 + $0xd0] ss:$8 sps:$4 sm:$0xff]  }
  0x18   :  { %v1073_v6 = vld [vmem:[%s1545_s0 + $0x1b4] ss:$8 sps:$4 sm:$0xff]   ;;  %v1076_v8 = vld [vmem:[%s1545_s0 + $0x1b0] ss:$8 sps:$4 sm:$0xff]  }
  0x1a   :  { %495 = vmatpush1.bf16.msra.mxu0 %v983_v9  ;;  %966 = vmatpush1.bf16.msra.mxu1 %v983_v9 }
  0x1b   :  { %496 = vmatprep.subr.bf16.mxu0 %v1077_v0  ;;  %951 = vmatprep.subr.bf16.mxu1 %v1077_v0 }
  0x1e   :  { %497 = vmatpush1.bf16.msra.mxu0 %v984_v10  ;;  %967 = vmatpush1.bf16.msra.mxu1 %v984_v10 }
  0x1f   :  { %498 = vmatprep.subr.bf16.mxu0 %v1077_v0  ;;  %952 = vmatprep.subr.bf16.mxu1 %v1077_v0 }
  0x22   :  { %499 = vmatpush1.bf16.msra.mxu0 %v985_v11  ;;  %968 = vmatpush1.bf16.msra.mxu1 %v985_v11 }
  0x23   :  { %500 = vmatprep.subr.bf16.mxu0 %v1077_v0  ;;  %953 = vmatprep.subr.bf16.mxu1 %v1077_v0 }
  0x26   :  { %501 = vmatpush1.bf16.msra.mxu0 %v986_v12  ;;  %969 = vmatpush1.bf16.msra.mxu1 %v986_v12 }
  0x27   :  { %502 = vmatprep.subr.bf16.mxu0 %v1077_v0  ;;  %954 = vmatprep.subr.bf16.mxu1 %v1077_v0 }
  0x2a   :  { %503 = vmatpush1.bf16.msra.mxu0 %v987_v13  ;;  %970 = vmatpush1.bf16.msra.mxu1 %v987_v13 }
  0x2b   :  { %504 = vmatprep.subr.bf16.mxu0 %v1077_v0  ;;  %955 = vmatprep.subr.bf16.mxu1 %v1077_v0 }
  0x2e   :  { %505 = vmatpush1.bf16.msra.mxu0 %v988_v14  ;;  %971 = vmatpush1.bf16.msra.mxu1 %v988_v14 }
  0x2f   :  { %506 = vmatprep.subr.bf16.mxu0 %v1077_v0  ;;  %956 = vmatprep.subr.bf16.mxu1 %v1077_v0 }
  0x32   :  { %507 = vmatpush1.bf16.msra.mxu0 %v989_v15  ;;  %972 = vmatpush1.bf16.msra.mxu1 %v989_v15 }
  0x33   :  { %508 = vmatprep.subr.bf16.mxu0 %v1077_v0  ;;  %957 = vmatprep.subr.bf16.mxu1 %v1077_v0 }
  0x36   :  { %509 = vmatpush1.bf16.msra.mxu0 %v990_v16  ;;  %973 = vmatpush1.bf16.msra.mxu1 %v990_v16 }
  0x37   :  { %510 = vmatprep.subr.bf16.mxu0 %v1077_v0  ;;  %958 = vmatprep.subr.bf16.mxu1 %v1077_v0 }
  0x3a   :  { %511 = vmatpush1.bf16.msra.mxu0 %v991_v17  ;;  %974 = vmatpush1.bf16.msra.mxu1 %v991_v17 }
  0x3b   :  { %512 = vmatprep.subr.bf16.mxu0 %v1077_v0  ;;  %959 = vmatprep.subr.bf16.mxu1 %v1077_v0  ;;  %v1064_v0 = vld [vmem:[%s1545_s0 + $0x190] ss:$8 sps:$4 sm:$0xff]  }
  0x3e   :  { %513 = vmatpush1.bf16.msra.mxu0 %v992_v18  ;;  %975 = vmatpush1.bf16.msra.mxu1 %v992_v18 }
  0x41   :  { %515 = vmatmul.mubr.bf16.vlgmr.msra.gmra.mrb[0].mxu0 %v993_v19  ;;  %627 = vmatmul.mubr.bf16.vlgmr.msra.gmra.mrb[0].mxu1 %v996_v20 }
  0x42   :  { %522 = vmatprep.mubr.bf16.mxu0 %v999_v21  ;;  %634 = vmatprep.mubr.bf16.mxu1 %v1001_v22 }
  0x49   :  { %523 = vmatmul.mubr.bf16.gmra.mrb[4].mxu0 %v1003_v23  ;;  %635 = vmatmul.mubr.bf16.gmra.mrb[4].mxu1 %v1004_v24 }
  0x4a   :  { %530 = vmatprep.mubr.bf16.mxu0 %v1005_v25  ;;  %642 = vmatprep.mubr.bf16.mxu1 %v1007_v26 }
  0x51   :  { %531 = vmatmul.mubr.bf16.gmra.mrb[8].mxu0 %v1009_v27  ;;  %643 = vmatmul.mubr.bf16.gmra.mrb[8].mxu1 %v1010_v28 }
  0x52   :  { %538 = vmatprep.mubr.bf16.mxu0 %v1011_v29  ;;  %650 = vmatprep.mubr.bf16.mxu1 %v1013_v30 }
  0x59   :  { %539 = vmatmul.mubr.bf16.gmra.mrb[12].mxu0 %v1015_v31  ;;  %651 = vmatmul.mubr.bf16.gmra.mrb[12].mxu1 %v1016_v32 }
  0x5a   :  { %546 = vmatprep.mubr.bf16.mxu0 %v1017_v33  ;;  %658 = vmatprep.mubr.bf16.mxu1 %v1019_v34 }
  0x61   :  { %547 = vmatmul.mubr.bf16.gmra.mrb[16].mxu0 %v1021_v35  ;;  %659 = vmatmul.mubr.bf16.gmra.mrb[16].mxu1 %v1022_v36 }
  0x62   :  { %554 = vmatprep.mubr.bf16.mxu0 %v1023_v37  ;;  %666 = vmatprep.mubr.bf16.mxu1 %v1025_v38 }
  0x69   :  { %555 = vmatmul.mubr.bf16.gmra.mrb[20].mxu0 %v1027_v39  ;;  %667 = vmatmul.mubr.bf16.gmra.mrb[20].mxu1 %v1028_v40 }
  0x6a   :  { %562 = vmatprep.mubr.bf16.mxu0 %v1029_v41  ;;  %674 = vmatprep.mubr.bf16.mxu1 %v1031_v42 }
  0x71   :  { %563 = vmatmul.mubr.bf16.gmra.mrb[24].mxu0 %v1033_v43  ;;  %675 = vmatmul.mubr.bf16.gmra.mrb[24].mxu1 %v1034_v44 }
  0x72   :  { %570 = vmatprep.mubr.bf16.mxu0 %v1035_v45  ;;  %682 = vmatprep.mubr.bf16.mxu1 %v1037_v46 }
  0x79   :  { %571 = vmatmul.mubr.bf16.gmra.mrb[28].mxu0 %v1039_v47  ;;  %683 = vmatmul.mubr.bf16.gmra.mrb[28].mxu1 %v1040_v48 }
  0x7a   :  { %578 = vmatprep.mubr.bf16.mxu0 %v1041_v49  ;;  %690 = vmatprep.mubr.bf16.mxu1 %v1043_v50 }
  0x81   :  { %579 = vmatmul.mubr.bf16.gmra.mrb[32].mxu0 %v1045_v51  ;;  %691 = vmatmul.mubr.bf16.gmra.mrb[32].mxu1 %v1046_v52 }
  0x82   :  { %586 = vmatprep.mubr.bf16.mxu0 %v1047_v53  ;;  %698 = vmatprep.mubr.bf16.mxu1 %v1049_v54 }
  0x89   :  { %587 = vmatmul.mubr.bf16.gmra.mrb[36].mxu0 %v1051_v55  ;;  %699 = vmatmul.mubr.bf16.gmra.mrb[36].mxu1 %v1052_v56 }
  0x8a   :  { %594 = vmatprep.mubr.bf16.mxu0 %v1053_v57  ;;  %706 = vmatprep.mubr.bf16.mxu1 %v1055_v58 }
  0x91   :  { %595 = vmatmul.mubr.bf16.gmra.mrb[40].mxu0 %v1057_v59  ;;  %707 = vmatmul.mubr.bf16.gmra.mrb[40].mxu1 %v1058_v60 }
  0x92   :  { %602 = vmatprep.mubr.bf16.mxu0 %v1059_v61  ;;  %714 = vmatprep.mubr.bf16.mxu1 %v1061_v62 }
  0x99   :  { %603 = vmatmul.mubr.bf16.gmra.mrb[44].mxu0 %v1063_v63  ;;  %715 = vmatmul.mubr.bf16.gmra.mrb[44].mxu1 %v1064_v0 }
  0x9a   :  { %610 = vmatprep.mubr.bf16.mxu0 %v1065_v1  ;;  %722 = vmatprep.mubr.bf16.mxu1 %v1067_v2 }
  0xa1   :  { %611 = vmatmul.mubr.bf16.gmra.mrb[48].mxu0 %v1069_v3  ;;  %723 = vmatmul.mubr.bf16.gmra.mrb[48].mxu1 %v1070_v4 }
  0xa2   :  { %618 = vmatprep.mubr.bf16.mxu0 %v1071_v5  ;;  %730 = vmatprep.mubr.bf16.mxu1 %v1073_v6 }
  0xa9   :  { %619 = vmatmul.mubr.bf16.gmra.mrb[52].mxu0 %v1075_v7  ;;  %731 = vmatmul.mubr.bf16.gmra.mrb[52].mxu1 %v1076_v8 }
 0x114   :  { %v1351_v9 = vpop.f32.mrb[0].mxu0  ;;  %v1353_v10 = vpop.f32.mrb[0].mxu1 }
 0x115   :  { %v518_v11 = vpop.f32.mrb[1].mxu0  ;;  %v630_v12 = vpop.f32.mrb[1].mxu1 }
 0x116   :  { %v1355_v13 = vpop.f32.mrb[2].mxu0  ;;  %v1357_v14 = vpop.f32.mrb[2].mxu1 }
 0x117   :  { %v521_v15 = vpop.f32.mrb[3].mxu0  ;;  %v633_v16 = vpop.f32.mrb[3].mxu1 }
 0x11c   :  { %v1359_v17 = vpop.f32.mrb[4].mxu0  ;;  %v1361_v18 = vpop.f32.mrb[4].mxu1 }
 0x11d   :  { %v526_v19 = vpop.f32.mrb[5].mxu0  ;;  %v638_v20 = vpop.f32.mrb[5].mxu1 }
 0x11e   :  { %v1363_v21 = vpop.f32.mrb[6].mxu0  ;;  %v1365_v22 = vpop.f32.mrb[6].mxu1 }
 0x11f   :  { %v529_v23 = vpop.f32.mrb[7].mxu0  ;;  %v641_v24 = vpop.f32.mrb[7].mxu1 }
 0x124   :  { %v1367_v25 = vpop.f32.mrb[8].mxu0  ;;  %v1369_v26 = vpop.f32.mrb[8].mxu1 }
 0x125   :  { %v534_v27 = vpop.f32.mrb[9].mxu0  ;;  %v646_v28 = vpop.f32.mrb[9].mxu1 }
 0x126   :  { %v1371_v29 = vpop.f32.mrb[10].mxu0  ;;  %v1373_v30 = vpop.f32.mrb[10].mxu1 }
 0x127   :  { %v537_v31 = vpop.f32.mrb[11].mxu0  ;;  %v649_v32 = vpop.f32.mrb[11].mxu1 }
 0x12c   :  { %v1375_v33 = vpop.f32.mrb[12].mxu0  ;;  %v1377_v34 = vpop.f32.mrb[12].mxu1 }
 0x12d   :  { %v542_v35 = vpop.f32.mrb[13].mxu0  ;;  %v654_v36 = vpop.f32.mrb[13].mxu1 }
 0x12e   :  { %v1379_v37 = vpop.f32.mrb[14].mxu0  ;;  %v1381_v38 = vpop.f32.mrb[14].mxu1 }
 0x12f   :  { %v739_v39 = vmax.f32 %v1351_v9, %v1379_v37  ;;  %v746_v40 = vmax.f32 %v1353_v10, %v1381_v38  ;;  %v545_v41 = vpop.f32.mrb[15].mxu0  ;;  %v657_v42 = vpop.f32.mrb[15].mxu1 }
 0x134   :  { %v1387_v43 = vpop.f32.mrb[16].mxu0  ;;  %v1389_v44 = vpop.f32.mrb[16].mxu1 }
 0x135   :  { %v740_v45 = vmax.f32 %v1355_v13, %v1387_v43  ;;  %v747_v46 = vmax.f32 %v1357_v14, %v1389_v44  ;;  %v550_v47 = vpop.f32.mrb[17].mxu0  ;;  %v662_v48 = vpop.f32.mrb[17].mxu1  ;;  %v817_v13 = vld [vmem:[%s1547_s3 + $0x8] sm:$0xff] }
 0x136   :  { %v1395_v49 = vpop.f32.mrb[18].mxu0  ;;  %v1397_v50 = vpop.f32.mrb[18].mxu1 }
 0x137   :  { %v741_v51 = vmax.f32 %v1359_v17, %v1395_v49  ;;  %v748_v52 = vmax.f32 %v1361_v18, %v1397_v50  ;;  %v553_v53 = vpop.f32.mrb[19].mxu0  ;;  %v665_v54 = vpop.f32.mrb[19].mxu1  ;;  %v818_v17 = vld [vmem:[%s1547_s3 + $0x10] sm:$0xff] }
 0x13c   :  { %v1403_v55 = vpop.f32.mrb[20].mxu0  ;;  %v1405_v56 = vpop.f32.mrb[20].mxu1 }
 0x13d   :  { %v742_v57 = vmax.f32 %v1363_v21, %v1403_v55  ;;  %v749_v58 = vmax.f32 %v1365_v22, %v1405_v56  ;;  %v558_v59 = vpop.f32.mrb[21].mxu0  ;;  %v670_v60 = vpop.f32.mrb[21].mxu1  ;;  %v819_v21 = vld [vmem:[%s1547_s3 + $0x18] sm:$0xff] }
 0x13e   :  { %v1411_v61 = vpop.f32.mrb[22].mxu0  ;;  %v1413_v62 = vpop.f32.mrb[22].mxu1 }
 0x13f   :  { %v743_v63 = vmax.f32 %v1367_v25, %v1411_v61  ;;  %v750_v0 = vmax.f32 %v1369_v26, %v1413_v62  ;;  %v561_v1 = vpop.f32.mrb[23].mxu0  ;;  %v673_v2 = vpop.f32.mrb[23].mxu1 }
 0x144   :  { %v1419_v3 = vpop.f32.mrb[24].mxu0  ;;  %v1421_v4 = vpop.f32.mrb[24].mxu1 }
 0x145   :  { %v566_v7 = vpop.f32.mrb[25].mxu0  ;;  %v678_v8 = vpop.f32.mrb[25].mxu1 }
 0x146   :  { %v1427_v11 = vpop.f32.mrb[26].mxu0  ;;  %v1429_v12 = vpop.f32.mrb[26].mxu1 }
 0x147   :  { %v569_v19 = vpop.f32.mrb[27].mxu0  ;;  %v681_v20 = vpop.f32.mrb[27].mxu1 }
 0x14c   :  { %v572_v23 = vpop.f32.mrb[28].mxu0  ;;  %v684_v24 = vpop.f32.mrb[28].mxu1 }
 0x14d   :  { %v574_v27 = vpop.f32.mrb[29].mxu0  ;;  %v686_v28 = vpop.f32.mrb[29].mxu1 }
 0x14e   :  { %v575_v31 = vpop.f32.mrb[30].mxu0  ;;  %v687_v32 = vpop.f32.mrb[30].mxu1 }
 0x14f   :  { %v577_v35 = vpop.f32.mrb[31].mxu0  ;;  %v689_v36 = vpop.f32.mrb[31].mxu1 }
 0x154   :  { %v580_v41 = vpop.f32.mrb[32].mxu0  ;;  %v692_v42 = vpop.f32.mrb[32].mxu1 }
 0x155   :  { %v582_v47 = vpop.f32.mrb[33].mxu0  ;;  %v694_v48 = vpop.f32.mrb[33].mxu1 }
 0x156   :  { %v1435_v53 = vpop.f32.mrb[34].mxu0  ;;  %v1437_v54 = vpop.f32.mrb[34].mxu1 }
 0x157   :  { %v585_v59 = vpop.f32.mrb[35].mxu0  ;;  %v697_v60 = vpop.f32.mrb[35].mxu1 }
 0x15c   :  { %v1439_v1 = vpop.f32.mrb[36].mxu0  ;;  %v1441_v2 = vpop.f32.mrb[36].mxu1 }
 0x15d   :  { %v590_v7 = vpop.f32.mrb[37].mxu0  ;;  %v702_v8 = vpop.f32.mrb[37].mxu1 }
 0x15e   :  { %v1443_v19 = vpop.f32.mrb[38].mxu0  ;;  %v1445_v20 = vpop.f32.mrb[38].mxu1  ;;  %v1457_v8 = vld [vmem:[%s1546_s2] ss:$0 sm:$0xff] }
 0x15f   :  { %v593_v27 = vpop.f32.mrb[39].mxu0  ;;  %v705_v28 = vpop.f32.mrb[39].mxu1 }
 0x164   :  { %v1447_v35 = vpop.f32.mrb[40].mxu0  ;;  %v1449_v36 = vpop.f32.mrb[40].mxu1 }
 0x165   :  { %v598_v47 = vpop.f32.mrb[41].mxu0  ;;  %v710_v48 = vpop.f32.mrb[41].mxu1 }
 0x166   :  { %v599_v59 = vpop.f32.mrb[42].mxu0  ;;  %v711_v60 = vpop.f32.mrb[42].mxu1 }
 0x167   :  { %v753_v16 = vmax.f32 %v572_v23, %v599_v59  ;;  %v760_v15 = vmax.f32 %v684_v24, %v711_v60  ;;  %v601_v6 = vpop.f32.mrb[43].mxu0  ;;  %v713_v5 = vpop.f32.mrb[43].mxu1 }
 0x169   :  { %v767_v7 = vmax.f32 %v739_v39, %v753_v16  ;;  %v774_v27 = vmax.f32 %v746_v40, %v760_v15 }
 0x16b   :  { %v788_v28 = vadd.f32 %v1457_v8, %v767_v7  ;;  %v795_v23 = vadd.f32 %v1457_v8, %v774_v27 }
 0x16c   :  { %v604_v24 = vpop.f32.mrb[44].mxu0  ;;  %v716_v6 = vpop.f32.mrb[44].mxu1 }
 0x16d   :  { %v754_v5 = vmax.f32 %v575_v31, %v604_v24  ;;  %v761_v47 = vmax.f32 %v687_v32, %v716_v6  ;;  %v606_v48 = vpop.f32.mrb[45].mxu0  ;;  %v718_v9 = vpop.f32.mrb[45].mxu1  ;;  %v802_v15 = vmax.f32 %v788_v28, 0.0  ;;  %v809_v59 = vmax.f32 %v795_v23, 0.0  ;;  %v816_v31 = vld [vmem:[%s1547_s3] sm:$0xff] }
 0x16e   :  { %v607_v37 = vpop.f32.mrb[46].mxu0  ;;  %v719_v39 = vpop.f32.mrb[46].mxu1 }
 0x16f   :  { %v768_v16 = vmax.f32 %v740_v45, %v754_v5  ;;  %v775_v10 = vmax.f32 %v747_v46, %v761_v47  ;;  %v609_v38 = vpop.f32.mrb[47].mxu0  ;;  %v721_v40 = vpop.f32.mrb[47].mxu1  ;;  %v755_v60 = vmax.f32 %v580_v41, %v607_v37  ;;  %v762_v7 = vmax.f32 %v692_v42, %v719_v39 }
 0x170   :  { %v823_v46 = vmul.f32 %v816_v31, %v802_v15  ;;  %v830_v41 = vmul.f32 %v816_v31, %v809_v59 }
 0x171   :  { %v789_v32 = vadd.f32 %v1457_v8, %v768_v16  ;;  %v796_v27 = vadd.f32 %v1457_v8, %v775_v10  ;;  %v769_v14 = vmax.f32 %v741_v51, %v755_v60  ;;  %v776_v43 = vmax.f32 %v748_v52, %v762_v7 }
 0x173   :  { %v803_v44 = vmax.f32 %v789_v32, 0.0  ;;  %v810_v45 = vmax.f32 %v796_v27, 0.0  ;;  %v790_v42 = vadd.f32 %v1457_v8, %v769_v14  ;;  %v797_v28 = vadd.f32 %v1457_v8, %v776_v43  ;;  %v820_v43 = vld [vmem:[%s1547_s3 + $0x20] sm:$0xff] }
 0x174   :  { %v612_v23 = vpop.f32.mrb[48].mxu0  ;;  %v724_v24 = vpop.f32.mrb[48].mxu1 }
 0x175   :  { %v824_v6 = vmul.f32 %v817_v13, %v803_v44  ;;  %v831_v5 = vmul.f32 %v817_v13, %v810_v45  ;;  %v756_v49 = vmax.f32 %v1435_v53, %v612_v23  ;;  %v763_v18 = vmax.f32 %v1437_v54, %v724_v24  ;;  %v614_v50 = vpop.f32.mrb[49].mxu0  ;;  %v726_v51 = vpop.f32.mrb[49].mxu1 }
 0x176   :  { %v804_v52 = vmax.f32 %v790_v42, 0.0  ;;  %v811_v47 = vmax.f32 %v797_v28, 0.0  ;;  %v615_v48 = vpop.f32.mrb[50].mxu0  ;;  %v727_v9 = vpop.f32.mrb[50].mxu1  ;;  %v1549_v42 = vmax.f32 %v1371_v29, %v1419_v3  ;;  %v1550_v23 = vmax.f32 %v1373_v30, %v1421_v4  ;;  %v821_v29 = vld [vmem:[%s1547_s3 + $0x28] sm:$0xff] }
 0x177   :  { %v837_v37 = vadd.f32 %v824_v6, %v823_v46  ;;  %v849_v39 = vadd.f32 %v831_v5, %v830_v41  ;;  %v770_v16 = vmax.f32 %v742_v57, %v756_v49  ;;  %v777_v10 = vmax.f32 %v749_v58, %v763_v18  ;;  %v617_v38 = vpop.f32.mrb[51].mxu0  ;;  %v729_v53 = vpop.f32.mrb[51].mxu1 }
 0x178   :  { %v825_v40 = vmul.f32 %v818_v17, %v804_v52  ;;  %v832_v54 = vmul.f32 %v818_v17, %v811_v47  ;;  %v757_v15 = vmax.f32 %v1439_v1, %v615_v48  ;;  %v764_v59 = vmax.f32 %v1441_v2, %v727_v9 }
 0x179   :  { %v791_v60 = vadd.f32 %v1457_v8, %v770_v16  ;;  %v798_v7 = vadd.f32 %v1457_v8, %v777_v10  ;;  %v1551_v30 = vmax.f32 %v1375_v33, %v1427_v11  ;;  %v1552_v4 = vmax.f32 %v1377_v34, %v1429_v12  ;;  %v822_v16 = vld [vmem:[%s1547_s3 + $0x30] sm:$0xff] }
 0x17a   :  { %v838_v31 = vadd.f32 %v837_v37, %v825_v40  ;;  %v850_v32 = vadd.f32 %v849_v39, %v832_v54  ;;  %v771_v22 = vmax.f32 %v743_v63, %v757_v15  ;;  %v778_v55 = vmax.f32 %v750_v0, %v764_v59 }
 0x17b   :  { %v805_v56 = vmax.f32 %v791_v60, 0.0  ;;  %v812_v57 = vmax.f32 %v798_v7, 0.0 }
 0x17c   :  { %v792_v58 = vadd.f32 %v1457_v8, %v771_v22  ;;  %v799_v1 = vadd.f32 %v1457_v8, %v778_v55  ;;  %v620_v2 = vpop.f32.mrb[52].mxu0  ;;  %v732_v27 = vpop.f32.mrb[52].mxu1 }
 0x17d   :  { %v826_v13 = vmul.f32 %v819_v21, %v805_v56  ;;  %v833_v14 = vmul.f32 %v819_v21, %v812_v57  ;;  %v758_v25 = vmax.f32 %v1443_v19, %v620_v2  ;;  %v765_v61 = vmax.f32 %v1445_v20, %v732_v27  ;;  %v622_v26 = vpop.f32.mrb[53].mxu0  ;;  %v734_v62 = vpop.f32.mrb[53].mxu1 }
 0x17e   :  { %v806_v63 = vmax.f32 %v792_v58, 0.0  ;;  %v813_v0 = vmax.f32 %v799_v1, 0.0  ;;  %v623_v44 = vpop.f32.mrb[54].mxu0  ;;  %v735_v45 = vpop.f32.mrb[54].mxu1 }
 0x17f   :  { %v839_v46 = vadd.f32 %v838_v31, %v826_v13  ;;  %v851_v41 = vadd.f32 %v850_v32, %v833_v14  ;;  %v772_v28 = vmax.f32 %v1549_v42, %v758_v25  ;;  %v779_v24 = vmax.f32 %v1550_v23, %v765_v61  ;;  %v625_v6 = vpop.f32.mrb[55].mxu0  ;;  %v737_v19 = vpop.f32.mrb[55].mxu1 }
 0x180   :  { %v827_v5 = vmul.f32 %v820_v43, %v806_v63  ;;  %v834_v20 = vmul.f32 %v820_v43, %v813_v0  ;;  %v759_v17 = vmax.f32 %v1447_v35, %v623_v44  ;;  %v766_v49 = vmax.f32 %v1449_v36, %v735_v45 }
 0x181   :  { %v793_v18 = vadd.f32 %v1457_v8, %v772_v28  ;;  %v800_v50 = vadd.f32 %v1457_v8, %v779_v24 }
 0x182   :  { %v840_v51 = vadd.f32 %v839_v46, %v827_v5  ;;  %v852_v52 = vadd.f32 %v851_v41, %v834_v20  ;;  %v773_v3 = vmax.f32 %v1551_v30, %v759_v17  ;;  %v780_v35 = vmax.f32 %v1552_v4, %v766_v49 }
 0x183   :  { %v807_v47 = vmax.f32 %v793_v18, 0.0  ;;  %v814_v36 = vmax.f32 %v800_v50, 0.0 }
 0x184   :  { %v794_v48 = vadd.f32 %v1457_v8, %v773_v3  ;;  %v801_v9 = vadd.f32 %v1457_v8, %v780_v35 }
 0x185   :  { %v828_v37 = vmul.f32 %v821_v29, %v807_v47  ;;  %v835_v39 = vmul.f32 %v821_v29, %v814_v36 }
 0x186   :  { %v808_v10 = vmax.f32 %v794_v48, 0.0  ;;  %v815_v38 = vmax.f32 %v801_v9, 0.0 }
 0x187   :  { %v841_v33 = vadd.f32 %v840_v51, %v828_v37  ;;  %v853_v11 = vadd.f32 %v852_v52, %v835_v39 }
 0x188   :  { %v829_v53 = vmul.f32 %v822_v16, %v808_v10  ;;  %v836_v40 = vmul.f32 %v822_v16, %v815_v38 }
 0x18a   :  { %v842_v34 = vadd.f32 %v841_v33, %v829_v53  ;;  %v854_v12 = vadd.f32 %v853_v11, %v836_v40 }
 0x18c   :  { %v843_v54 = vrot.slane %v842_v34, 4  ;;  %v855_v15 = vrot.slane %v854_v12, 4 }
 0x18e   :  { %v844_v59 = vadd.f32 %v843_v54, %v842_v34  ;;  %v856_v60 = vadd.f32 %v855_v15, %v854_v12 }
 0x190   :  { %v845_v7 = vrot.slane %v844_v59, 2  ;;  %v857_v8 = vrot.slane %v856_v60, 2 }
 0x192   :  { %v846_v31 = vadd.f32 %v845_v7, %v844_v59  ;;  %v858_v32 = vadd.f32 %v857_v8, %v856_v60 }
 0x194   :  { %v847_v21 = vrot.slane %v846_v31, 1  ;;  %v859_v22 = vrot.slane %v858_v32, 1 }
 0x196   :  { %v848_v55 = vadd.f32 %v847_v21, %v846_v31  ;;  %v860_v56 = vadd.f32 %v859_v22, %v858_v32 }
 0x198   :  { %v864_v57 = vsel %vm863_vm0, %v860_v56, %v848_v55 }
 0x199   :  { %866 = vst [vmem:[%s1548_s4] sm:$0x3] %v864_v57 }

// kernel: tile.33
= control target key start
LH: loop header
LB: loop body
LE: loop exit
PB: predicated region body
PF: predicated region fallthrough
CT: control target
= control target key end

     0   :  { %s22_s0 = inlined_call_operand.vmem [shape: f32[64], index: 0, kind: input, shape index: {}]   ;;  %s23_s1 = inlined_call_operand.vmem [shape: f32[2,64], index: 1, kind: output, shape index: {}]  }
   0x1   :  { %v4_v0 = vld [vmem:[%s22_s0] ss:$0 sm:$0xff] }
   0x2   :  { %5 = vst [vmem:[%s23_s1] sm:$0x3] %v4_v0 }

// kernel: m2tr_forward.3
= control target key start
LH: loop header
LB: loop body
LE: loop exit
PB: predicated region body
PF: predicated region fallthrough
CT: control target
= control target key end

     0   :  { %v731_v0 = vmov 0.0   ;;  %vm732_vm0 = vmmov 0   ;;  %v733_v3 = vmov 0   ;;  %v70_v27 = vlaneseq  ;;  %s956_s1 = inlined_call_operand.vmem [shape: bf16[128,384], index: 1, kind: input, shape index: {}]   ;;  %s957_s0 = inlined_call_operand.vmem [shape: bf16[2,128], index: 0, kind: input, shape index: {}]   ;;  %s958_s2 = inlined_call_operand.vmem [shape: f32[1,384], index: 2, kind: input, shape index: {}]   ;;  %s959_s3 = inlined_call_operand.vmem [shape: bf16[128,128], index: 3, kind: input, shape index: {}]   ;;  %s960_s4 = inlined_call_operand.vmem [shape: f32[1,128], index: 4, kind: input, shape index: {}]   ;;  %s961_s8 = inlined_call_operand.<no memory space> [shape: f32[1,1], index: 8, kind: input, shape index: {}]   ;;  %s962_s5 = inlined_call_operand.vmem [shape: f32[1,128], index: 5, kind: input, shape index: {}]   ;;  %s963_s6 = inlined_call_operand.vmem [shape: f32[1,128], index: 6, kind: input, shape index: {}]   ;;  %s964_s7 = inlined_call_operand.vmem [shape: f32[1,128], index: 7, kind: input, shape index: {}]   ;;  %s965_s9 = inlined_call_operand.vmem [shape: f32[2,1], index: 9, kind: output, shape index: {}]  }
   0x1   :  { %627 = vmatprep.subr.bf16.mxu1 %v731_v0  ;;  %v671_v1 = vld [vmem:[%s956_s1 + $0x4] ss:$12 sps:$4 sm:$0xff]   ;;  %643 = vmatprep.mubr.msk.bf16.mxu1 %vm732_vm0, %v731_v0  ;;  %v673_v2 = vld [vmem:[%s956_s1 + $0x8] ss:$12 sps:$4 sm:$0xff]   ;;  %v674_v4 = vld [vmem:[%s956_s1] ss:$12 sps:$4 sm:$0xff]  }
   0x2   :  { %245 = vmatprep.mubr.bf16.mxu0 %v733_v3  ;;  %213 = vmatprep.subr.bf16.mxu0 %v671_v1  ;;  %v675_v5 = vld [vmem:[%s956_s1 + $0x1c] ss:$12 sps:$4 sm:$0xff]   ;;  %v677_v6 = vld [vmem:[%s956_s1 + $0x20] ss:$12 sps:$4 sm:$0xff]   ;;  %v678_v7 = vld [vmem:[%s956_s1 + $0x18] ss:$12 sps:$4 sm:$0xff]  }
   0x3   :  { %628 = vmatpush3.bf16.msra.mxu1 %v673_v2  ;;  %214 = vmatpush1.bf16.msra.mxu0 %v674_v4  ;;  %v679_v8 = vld [vmem:[%s956_s1 + $0x34] ss:$12 sps:$4 sm:$0xff]   ;;  %v681_v9 = vld [vmem:[%s956_s1 + $0x38] ss:$12 sps:$4 sm:$0xff]   ;;  %v682_v10 = vld [vmem:[%s956_s1 + $0x30] ss:$12 sps:$4 sm:$0xff]  }
   0x4   :  { %629 = vmatprep.subr.bf16.mxu1 %v731_v0  ;;  %215 = vmatprep.subr.bf16.mxu0 %v675_v5  ;;  %v683_v11 = vld [vmem:[%s956_s1 + $0x4c] ss:$12 sps:$4 sm:$0xff]   ;;  %v685_v12 = vld [vmem:[%s956_s1 + $0x50] ss:$12 sps:$4 sm:$0xff]   ;;  %v686_v13 = vld [vmem:[%s956_s1 + $0x48] ss:$12 sps:$4 sm:$0xff]  }
   0x5   :  { %v687_v14 = vld [vmem:[%s956_s1 + $0x64] ss:$12 sps:$4 sm:$0xff]   ;;  %v689_v15 = vld [vmem:[%s956_s1 + $0x68] ss:$12 sps:$4 sm:$0xff]   ;;  %v690_v16 = vld [vmem:[%s956_s1 + $0x60] ss:$12 sps:$4 sm:$0xff]  }
   0x6   :  { %v691_v17 = vld [vmem:[%s956_s1 + $0x7c] ss:$12 sps:$4 sm:$0xff]   ;;  %v693_v18 = vld [vmem:[%s956_s1 + $0x80] ss:$12 sps:$4 sm:$0xff]   ;;  %v694_v19 = vld [vmem:[%s956_s1 + $0x78] ss:$12 sps:$4 sm:$0xff]  }
   0x7   :  { %630 = vmatpush3.bf16.msra.mxu1 %v677_v6  ;;  %216 = vmatpush1.bf16.msra.mxu0 %v678_v7  ;;  %v695_v20 = vld [vmem:[%s956_s1 + $0x94] ss:$12 sps:$4 sm:$0xff]   ;;  %v697_v21 = vld [vmem:[%s956_s1 + $0x98] ss:$12 sps:$4 sm:$0xff]   ;;  %v698_v22 = vld [vmem:[%s956_s1 + $0x90] ss:$12 sps:$4 sm:$0xff]  }
   0x8   :  { %631 = vmatprep.subr.bf16.mxu1 %v731_v0  ;;  %217 = vmatprep.subr.bf16.mxu0 %v679_v8  ;;  %v699_v23 = vld [vmem:[%s956_s1 + $0xac] ss:$12 sps:$4 sm:$0xff]   ;;  %v701_v24 = vld [vmem:[%s956_s1 + $0xb0] ss:$12 sps:$4 sm:$0xff]   ;;  %v702_v25 = vld [vmem:[%s956_s1 + $0xa8] ss:$12 sps:$4 sm:$0xff]  }
   0x9   :  { %v35_v26 = vld [vmem:[%s957_s0] sm:$0x1]  ;;  %v71_v28 = vshrl.u32 %v70_v27, 7  ;;  %s734_s0 = smov 64   ;;  %vm299_vm1 = vcmask 517120   ;;  %vm373_vm2 = vcmask 523264  }
   0xa   :  { %v68_v30 = vld [vmem:[%s958_s2] sm:$0x7]  ;;  %vm548_vm3 = vcmask 1041408   ;;  %vm566_vm4 = vcmask 1024  }
   0xb   :  { %632 = vmatpush3.bf16.msra.mxu1 %v681_v9  ;;  %218 = vmatpush1.bf16.msra.mxu0 %v682_v10  ;;  %v80_v29 = vsub.s32 2, %v71_v28  ;;  %v72_v31 = vsub.s32 0, %v71_v28  ;;  %v76_v32 = vsub.s32 1, %v71_v28 }
   0xc   :  { %633 = vmatprep.subr.bf16.mxu1 %v731_v0  ;;  %219 = vmatprep.subr.bf16.mxu0 %v683_v11 }
   0xd   :  { %v81_v33 = vrot.slane %v68_v30, %v80_v29  ;;  %v73_v34 = vrot.slane %v68_v30, %v72_v31  ;;  %v77_v35 = vrot.slane %v68_v30, %v76_v32  ;;  %v706_v31 = vld [vmem:[%s959_s3 + $0x18] sm:$0xff]   ;;  %v707_v32 = vld [vmem:[%s959_s3 + $0x20] sm:$0xff]  }
   0xf   :  { %634 = vmatpush3.bf16.msra.mxu1 %v685_v12  ;;  %220 = vmatpush1.bf16.msra.mxu0 %v686_v13 }
  0x10   :  { %635 = vmatprep.subr.bf16.mxu1 %v731_v0  ;;  %221 = vmatprep.subr.bf16.mxu0 %v687_v14 }
  0x13   :  { %636 = vmatpush3.bf16.msra.mxu1 %v689_v15  ;;  %222 = vmatpush1.bf16.msra.mxu0 %v690_v16 }
  0x14   :  { %637 = vmatprep.subr.bf16.mxu1 %v731_v0  ;;  %223 = vmatprep.subr.bf16.mxu0 %v691_v17 }
  0x17   :  { %638 = vmatpush3.bf16.msra.mxu1 %v693_v18  ;;  %224 = vmatpush1.bf16.msra.mxu0 %v694_v19 }
  0x18   :  { %639 = vmatprep.subr.bf16.mxu1 %v731_v0  ;;  %225 = vmatprep.subr.bf16.mxu0 %v695_v20 }
  0x1b   :  { %640 = vmatpush3.bf16.msra.mxu1 %v697_v21  ;;  %226 = vmatpush1.bf16.msra.mxu0 %v698_v22 }
  0x1c   :  { %641 = vmatprep.subr.bf16.mxu1 %v731_v0  ;;  %227 = vmatprep.subr.bf16.mxu0 %v699_v23 }
  0x1f   :  { %642 = vmatpush3.bf16.msra.mxu1 %v701_v24  ;;  %228 = vmatpush1.bf16.msra.mxu0 %v702_v25  ;;  %v703_v24 = vld [vmem:[%s959_s3] sm:$0xff]   ;;  %v704_v25 = vld [vmem:[%s959_s3 + $0x8] sm:$0xff]  }
  0x20   :  { %647 = vmatprep.subr.bf16.mxu0 %v731_v0 }
  0x22   :  { %644 = vmatmul.mubr.bf16.vlgmr.msra.gmra.mrb[0].mxu1 %v35_v26  ;;  %246 = vmatmul.mubr.bf16.vlgmr.msra.gmra.mrb[0].mxu0 %v35_v26  ;;  %v705_v26 = vld [vmem:[%s959_s3 + $0x10] sm:$0xff]  }
  0x23   :  { %663 = vmatprep.mubr.msk.bf16.mxu0 %vm732_vm0, %v731_v0  ;;  %648 = vmatpush3.bf16.msra.mxu0 %v703_v24 }
  0x24   :  { %649 = vmatprep.subr.bf16.mxu0 %v731_v0 }
  0x27   :  { %650 = vmatpush3.bf16.msra.mxu0 %v704_v25 }
  0x28   :  { %651 = vmatprep.subr.bf16.mxu0 %v731_v0 }
  0x2b   :  { %652 = vmatpush3.bf16.msra.mxu0 %v705_v26 }
  0x2c   :  { %653 = vmatprep.subr.bf16.mxu0 %v731_v0 }
  0x2f   :  { %654 = vmatpush3.bf16.msra.mxu0 %v706_v31 }
  0x30   :  { %655 = vmatprep.subr.bf16.mxu0 %v731_v0 }
  0x33   :  { %656 = vmatpush3.bf16.msra.mxu0 %v707_v32 }
  0x34   :  { %657 = vmatprep.subr.bf16.mxu0 %v731_v0 }
  0xf5   :  { %v288_v36 = vpop.f32.mrb[0].mxu1  ;;  %v247_v38 = vpop.f32.mrb[0].mxu0 }
  0xf6   :  { %v876_v37 = vadd.f32 %v288_v36, %v81_v33  ;;  %v645_v39 = vpop.f32.mrb[1].mxu1  ;;  %v249_v41 = vpop.f32.mrb[1].mxu0  ;;  %v248_v42 = vadd.f32 %v247_v38, %v73_v34  ;;  %v708_v33 = vld [vmem:[%s959_s3 + $0x28] sm:$0xff]   ;;  %v709_v34 = vld [vmem:[%s959_s3 + $0x30] sm:$0xff]  }
  0xf7   :  { %v291_v40 = vpop.f32.mrb[2].mxu1  ;;  %v880_v44 = vadd.f32 %v249_v41, %v77_v35  ;;  %v251_v45 = vpop.f32.mrb[2].mxu0  ;;  %658 = vmatpush3.bf16.msra.mxu0 %v708_v33  ;;  %v710_v35 = vld [vmem:[%s959_s3 + $0x38] sm:$0xff]  }
  0xf8   :  { %319 = vrot.lane.b32.xlu0 %v876_v37, %s734_s0  ;;  %v646_v43 = vpop.f32.mrb[3].mxu1  ;;  %v252_v46 = vpop.f32.mrb[3].mxu0  ;;  %v304_v57 = vmul.f32 %v876_v37, %v248_v42  ;;  %659 = vmatprep.subr.bf16.mxu0 %v731_v0  ;;  %v596_v45 = vld [vmem:[%s960_s4] ss:$0 sm:$0xff] }
  0xf9   :  { %v309_v47 = vmul.f32 %v880_v44, %v248_v42 }
  0xfa   :  { %v305_v58 = vsel %vm299_vm1, %v304_v57, 0.0 }
  0xfb   :  { %660 = vmatpush3.bf16.msra.mxu0 %v709_v34 }
  0xfc   :  { %311 = vrot.lane.b32.xlu0 %v309_v47, %s734_s0  ;;  %661 = vmatprep.subr.bf16.mxu0 %v731_v0 }
  0xff   :  { %662 = vmatpush3.bf16.msra.mxu0 %v710_v35 }
 0x16a   :  { %v320_v48 = vpop.permute.xlu0 %319 }
 0x16b   :  { %v322_v49 = vmul.f32 %v320_v48, %v880_v44 }
 0x16d   :  { %324 = vrot.lane.b32.xlu1 %v322_v49, %s734_s0 }
 0x16e   :  { %v312_v50 = vpop.permute.xlu0 %311 }
 0x16f   :  { %v314_v51 = vsel %vm299_vm1, %v312_v50, 0.0 }
 0x170   :  { %315 = vadd.xlane.f32.xlu0 %v314_v51 }
 0x171   :  { %295 = vrot.lane.b32.xlu1 %v248_v42, %s734_s0 }
 0x1df   :  { %v325_v52 = vpop.permute.xlu1 %324 }
 0x1e0   :  { %v327_v53 = vsel %vm299_vm1, %v325_v52, 0.0 }
 0x1e1   :  { %328 = vadd.xlane.f32.xlu1 %v327_v53 }
 0x1e3   :  { %v296_v54 = vpop.permute.xlu1 %295 }
 0x1e4   :  { %v298_v55 = vmul.f32 %v296_v54, %v248_v42 }
 0x1e6   :  { %v300_v56 = vsel %vm299_vm1, %v298_v55, 0.0 }
 0x1e7   :  { %301 = vadd.xlane.f32.xlu0 %v300_v56 }
 0x1eb   :  { %306 = vadd.xlane.f32.xlu0 %v305_v58 }
 0x1fd   :  { %v316_v59 = vpop.xlane.xlu0 %315 }
 0x1fe   :  { %v317_v60 = vmul.f32 0.125, %v316_v59 }
 0x26e   :  { %v329_v61 = vpop.xlane.xlu1 %328 }
 0x26f   :  { %v330_v62 = vmul.f32 0.125, %v329_v61 }
 0x271   :  { %v350_v63 = vmax.f32 %v317_v60, %v330_v62 }
 0x273   :  { %v351_v1 = vsub.f32 %v317_v60, %v350_v63  ;;  %v354_v2 = vsub.f32 %v330_v62, %v350_v63 }
 0x274   :  { %v302_v3 = vpop.xlane.xlu0 %301 }
 0x275   :  { %v352_v4 = vmul.f32 1.442695, %v351_v1  ;;  %v355_v5 = vmul.f32 1.442695, %v354_v2  ;;  %v303_v7 = vmul.f32 0.125, %v302_v3  ;;  %v14_v2 = vstv %s961_s8 }
 0x276   :  { %15 = vst [vmem:[#allocation2] sm:$0x1] %v14_v2 }
 0x277   :  { %711 = vpow2.f32 %v352_v4 }
 0x278   :  { %713 = vpow2.f32 %v355_v5  ;;  %v307_v6 = vpop.xlane.xlu0 %306 }
 0x279   :  { %v308_v8 = vmul.f32 0.125, %v307_v6 }
 0x27b   :  { %v331_v9 = vmax.f32 %v303_v7, %v308_v8 }
 0x27d   :  { %v332_v10 = vsub.f32 %v303_v7, %v331_v9  ;;  %v335_v11 = vsub.f32 %v308_v8, %v331_v9 }
 0x27f   :  { %v333_v12 = vmul.f32 1.442695, %v332_v10  ;;  %v336_v13 = vmul.f32 1.442695, %v335_v11 }
 0x281   :  { %v712_v14 = vpop.eup %711  ;;  %715 = vpow2.f32 %v333_v12 }
 0x282   :  { %v714_v15 = vpop.eup %713  ;;  %717 = vpow2.f32 %v336_v13  ;;  %v605_v13 = vld [vmem:[%s962_s5] ss:$0 sm:$0xff] }
 0x283   :  { %v357_v16 = vadd.f32 %v714_v15, %v712_v14 }
 0x285   :  { %719 = vrcp.f32 %v357_v16 }
 0x28b   :  { %v716_v17 = vpop.eup %715 }
 0x28c   :  { %v718_v18 = vpop.eup %717 }
 0x28d   :  { %v338_v19 = vadd.f32 %v718_v18, %v716_v17 }
 0x28f   :  { %v720_v20 = vpop.eup %719  ;;  %721 = vrcp.f32 %v338_v19 }
 0x290   :  { %v362_v21 = vmul.f32 %v720_v20, %v714_v15  ;;  %v360_v22 = vmul.f32 %v720_v20, %v712_v14  ;;  %v606_v15 = vld [vmem:[%s963_s6] ss:$0 sm:$0xff] }
 0x292   :  { %v363_v23 = vmul.f32 %v362_v21, %v876_v37  ;;  %v361_v36 = vmul.f32 %v360_v22, %v880_v44  ;;  %v608_v21 = vld [vmem:[#allocation2] ss:$0 sm:$0xff] }
 0x294   :  { %365 = vrot.lane.b32.xlu1 %v363_v23, %s734_s0 }
 0x299   :  { %v722_v27 = vpop.eup %721 }
 0x29a   :  { %v343_v28 = vmul.f32 %v722_v27, %v718_v18  ;;  %v341_v29 = vmul.f32 %v722_v27, %v716_v17  ;;  %v607_v17 = vld [vmem:[%s964_s7] ss:$0 sm:$0xff] }
 0x29c   :  { %v344_v30 = vmul.f32 %v343_v28, %v876_v37  ;;  %v342_v40 = vmul.f32 %v341_v29, %v880_v44 }
 0x29e   :  { %346 = vrot.lane.b32.xlu0 %v344_v30, %s734_s0 }
 0x306   :  { %v366_v37 = vpop.permute.xlu1 %365 }
 0x307   :  { %v368_v38 = vadd.f32 %v366_v37, %v361_v36 }
 0x309   :  { %370 = vrot.lane.b32.xlu1 %v368_v38, %s734_s0 }
 0x310   :  { %v347_v39 = vpop.permute.xlu0 %346 }
 0x311   :  { %v349_v41 = vadd.f32 %v347_v39, %v342_v40 }
 0x37b   :  { %v371_v42 = vpop.permute.xlu1 %370 }
 0x37c   :  { %v374_v43 = vsel %vm373_vm2, %v349_v41, %v371_v42 }
 0x37d   :  { %v375_v0 = vpack.c.bf16 %v374_v43, %v374_v43 }
 0x37f   :  { %664 = vmatmul.mubr.bf16.vlgmr.msra.gmra.mrb[4].mxu0 %v375_v0 }
 0x452   :  { %v481_v46 = vpop.f32.mrb[4].mxu0 }
 0x453   :  { %v482_v47 = vadd.f32 %v596_v45, %v481_v46  ;;  %v665_v48 = vpop.f32.mrb[5].mxu0 }
 0x454   :  { %v484_v49 = vpop.f32.mrb[6].mxu0 }
 0x455   :  { %v487_v50 = vmax.f32 %v482_v47, 0.0  ;;  %v666_v51 = vpop.f32.mrb[7].mxu0 }
 0x457   :  { %503 = vrot.lane.b32.xlu1 %v487_v50, %s734_s0  ;;  %v488_v44 = vsel %vm299_vm1, %v487_v50, 0.0 }
 0x47b   :  { %489 = vadd.xlane.f32.xlu1 %v488_v44 }
 0x4c9   :  { %v504_v52 = vpop.permute.xlu1 %503 }
 0x4ca   :  { %v506_v53 = vsel %vm299_vm1, %v504_v52, 0.0 }
 0x4cb   :  { %507 = vadd.xlane.f32.xlu0 %v506_v53 }
 0x508   :  { %v490_v54 = vpop.xlane.xlu1 %489 }
 0x509   :  { %v492_v55 = vmul.f32 0.015625, %v490_v54 }
 0x50b   :  { %v493_v56 = vsub.f32 %v487_v50, %v492_v55 }
 0x50d   :  { %v494_v57 = vmul.f32 %v493_v56, %v493_v56 }
 0x50f   :  { %v495_v58 = vsel %vm299_vm1, %v494_v57, 0.0 }
 0x510   :  { %496 = vadd.xlane.f32.xlu1 %v495_v58 }
 0x558   :  { %v508_v59 = vpop.xlane.xlu0 %507 }
 0x559   :  { %v509_v60 = vmul.f32 0.015625, %v508_v59 }
 0x55b   :  { %v510_v61 = vsub.f32 %v487_v50, %v509_v60 }
 0x55d   :  { %v511_v62 = vmul.f32 %v510_v61, %v510_v61 }
 0x55f   :  { %513 = vrot.lane.b32.xlu0 %v511_v62, %s734_s0 }
 0x59d   :  { %v497_v3 = vpop.xlane.xlu1 %496 }
 0x59e   :  { %v498_v4 = vmul.f32 0.015625, %v497_v3 }
 0x5a0   :  { %v499_v5 = vadd.f32 1e-05, %v498_v4 }
 0x5a2   :  { %723 = vrsqrt.f32 %v499_v5 }
 0x5ac   :  { %v724_v9 = vpop.eup %723 }
 0x5ad   :  { %v501_v11 = vmul.f32 %v724_v9, %v493_v56 }
 0x5d1   :  { %v514_v63 = vpop.permute.xlu0 %513 }
 0x5d2   :  { %v516_v1 = vsel %vm299_vm1, %v514_v63, 0.0 }
 0x5d3   :  { %517 = vadd.xlane.f32.xlu1 %v516_v1 }
 0x660   :  { %v518_v6 = vpop.xlane.xlu1 %517 }
 0x661   :  { %v519_v7 = vmul.f32 0.015625, %v518_v6 }
 0x663   :  { %v520_v8 = vadd.f32 1e-05, %v519_v7 }
 0x665   :  { %725 = vrsqrt.f32 %v520_v8 }
 0x66f   :  { %v726_v10 = vpop.eup %725 }
 0x670   :  { %v522_v12 = vmul.f32 %v726_v10, %v510_v61 }
 0x672   :  { %v523_v14 = vsel %vm373_vm2, %v501_v11, %v522_v12 }
 0x673   :  { %v531_v16 = vmul.f32 %v605_v13, %v523_v14 }
 0x675   :  { %v539_v18 = vadd.f32 %v606_v15, %v531_v16 }
 0x677   :  { %v547_v19 = vmul.f32 %v607_v17, %v539_v18 }
 0x679   :  { %v549_v20 = vsel %vm548_vm3, %v547_v19, 0.0 }
 0x67a   :  { %550 = vadd.xlane.f32.xlu1 %v549_v20 }
 0x707   :  { %v551_v22 = vpop.xlane.xlu1 %550 }
 0x708   :  { %v559_v23 = vadd.f32 %v608_v21, %v551_v22 }
 0x70a   :  { %v560_v24 = vsub.f32 0.0, %v559_v23 }
 0x70c   :  { %v561_v25 = vmul.f32 1.442695, %v560_v24 }
 0x70e   :  { %727 = vpow2.f32 %v561_v25 }
 0x718   :  { %v728_v26 = vpop.eup %727 }
 0x719   :  { %v563_v27 = vadd.f32 1.0, %v728_v26 }
 0x71b   :  { %729 = vrcp.f32 %v563_v27 }
 0x725   :  { %v730_v28 = vpop.eup %729 }
 0x726   :  { %567 = vst.msk [vmem:[%s965_s9] sm:$0x3] %vm566_vm4, %v730_v28 }

</bundles_post_ra>
